<compile_context>
chip_gen: v7x
topology: tpu7x:2x2x1
jax: 0.10.0
libtpu: 0.0.40
codegen_flags: <defaults>
</compile_context>

<pallas_src>
import functools

import jax
import jax.numpy as jnp
from jax.experimental import pallas as pl
from jax.experimental.pallas import tpu as pltpu


def policy_kernel(x_ref, w1_ref, w2_ref, mask_ref, o_ref):
    # x: (BB, S) f32, w1: (S, H) f32, w2: (H, A_pad) bf16, mask: (1, A_pad) f32.
    x = x_ref[...].astype(jnp.float32)
    S = x_ref.shape[1]

    if S <= 8:
        # Layer 1 on the VPU: S broadcast multiply-adds.  Avoids feeding a
        # K=4, 4-lane-wide LHS tile to the MXU (masked-load path, wasted K).
        h = x[:, 0:1] * w1_ref[0:1, :]
        for s in range(1, S):
            h = h + x[:, s : s + 1] * w1_ref[s : s + 1, :]
    else:
        # Larger state spaces: use the MXU in bf16 with f32 accumulation.
        h = jnp.dot(
            x.astype(jnp.bfloat16),
            w1_ref[...].astype(jnp.bfloat16),
            preferred_element_type=jnp.float32,
        )

    # Dropout(p=0.6) -> identity at inference; ReLU in f32.
    h = jnp.maximum(h, 0.0)

    # Layer 2 on the MXU: bf16 operands, f32 accumulate.
    logits = jnp.dot(
        h.astype(jnp.bfloat16), w2_ref[...], preferred_element_type=jnp.float32
    )

    # Precomputed additive mask: 0 on real action lanes, -1e30 on padded lanes.
    logits = logits + mask_ref[...]

    # Numerically stable softmax over the last axis (PyTorch dim=1 for 2-D input),
    # exact normalization so rows sum to 1 to f32 precision.
    m = jnp.max(logits, axis=-1, keepdims=True)
    e = jnp.exp(logits - m)
    denom = jnp.sum(e, axis=-1, keepdims=True)
    o_ref[...] = (e / denom).astype(o_ref.dtype)


def prepare_policy_params(w1_t, w2_t):
    """One-time (out-of-jit) weight prep: lane-pad + bf16-cast w2, build action mask.

    w1_t: (S, 256) f32, w2_t: (256, A) f32  ->  (w1_f32, w2_pad_bf16, neg_mask, A)
    """
    S, H = w1_t.shape
    H2, A = w2_t.shape
    assert H == H2
    a_pad = pl.cdiv(A, 128) * 128
    w2_pad = (
        jnp.zeros((H, a_pad), jnp.bfloat16).at[:, :A].set(w2_t.astype(jnp.bfloat16))
    )
    neg_mask = (
        jnp.where(jnp.arange(a_pad) < A, 0.0, -1e30)
        .astype(jnp.float32)
        .reshape(1, a_pad)
    )
    return w1_t.astype(jnp.float32), w2_pad, neg_mask, A


@functools.partial(jax.jit, static_argnames=("num_actions", "block_b"))
def policy_forward(x, w1_t, w2_pad, neg_mask, *, num_actions, block_b=256):
    """x: (B, S) f32 -> (B, num_actions) f32 action probabilities."""
    B, S = x.shape
    H, a_pad = w2_pad.shape

    # Round the batch up to the sublane granule only if needed (no-op for
    # typical rollout batches); block covers the whole batch in one grid step
    # at demo sizes.  For v7x megacore, pass block_b ~= ceil(B/2) instead.
    b8 = pl.cdiv(B, 8) * 8
    if b8 != B:
        x = jnp.pad(x, ((0, b8 - B), (0, 0)))
    bb = min(block_b, b8)
    grid = (pl.cdiv(b8, bb),)

    flops = 2 * b8 * (S * H + H * a_pad)
    transcendentals = b8 * a_pad
    bytes_accessed = (
        b8 * S * 4  # x
        + S * H * 4  # w1 (f32)
        + H * a_pad * 2  # w2 (bf16)
        + a_pad * 4  # mask
        + b8 * a_pad * 4  # out
    )

    out = pl.pallas_call(
        policy_kernel,
        out_shape=jax.ShapeDtypeStruct((b8, a_pad), jnp.float32),
        grid_spec=pltpu.PrefetchScalarGridSpec(
            num_scalar_prefetch=0,
            grid=grid,
            in_specs=[
                # Batched activations: new tile per grid step (auto double-buffered).
                pl.BlockSpec((bb, S), lambda i: (i, 0)),
                # Weights / mask: constant block index -> DMA'd once, VMEM-resident.
                pl.BlockSpec((S, H), lambda i: (0, 0)),
                pl.BlockSpec((H, a_pad), lambda i: (0, 0)),
                pl.BlockSpec((1, a_pad), lambda i: (0, 0)),
            ],
            out_specs=pl.BlockSpec((bb, a_pad), lambda i: (i, 0)),
        ),
        compiler_params=pltpu.CompilerParams(
            dimension_semantics=("parallel",),  # megacore sharding on v7x
        ),
        cost_estimate=pl.CostEstimate(
            flops=flops,
            transcendentals=transcendentals,
            bytes_accessed=bytes_accessed,
        ),
    )(x, w1_t, w2_pad, neg_mask)

    return out[:B, :num_actions]


def init_params(key, state_space, hidden, action_space):
    """Deterministic init matching PyTorch Linear default: U(-1/sqrt(in), 1/sqrt(in))."""
    k1, k2 = jax.random.split(key)
    b1 = 1.0 / jnp.sqrt(jnp.float32(state_space))
    b2 = 1.0 / jnp.sqrt(jnp.float32(hidden))
    # PyTorch stores (out, in); we return the transposed (in, out) layout.
    w1_t = jax.random.uniform(k1, (state_space, hidden), jnp.float32, -b1, b1)
    w2_t = jax.random.uniform(k2, (hidden, action_space), jnp.float32, -b2, b2)
    return w1_t, w2_t


if __name__ == "__main__":
    # CartPole-ish sizes: state_space=4, action_space=2, hidden=256.
    # Batch of 256 environment states evaluated in ONE pallas_call / ONE grid step.
    state_space, hidden, action_space, batch = 4, 256, 2, 256

    key = jax.random.PRNGKey(0)
    kx, kp = jax.random.split(key)
    x = jax.random.normal(kx, (batch, state_space), jnp.float32)
    w1_raw, w2_raw = init_params(kp, state_space, hidden, action_space)

    # One-time weight prep (outside the jitted forward).
    w1_t, w2_pad, neg_mask, A = prepare_policy_params(w1_raw, w2_raw)

    out = policy_forward(x, w1_t, w2_pad, neg_mask, num_actions=A, block_b=256)
    out = jax.block_until_ready(out)
    assert out.shape == (batch, action_space)

    # Reference matching the kernel's numerics (layer 1 f32, layer 2 bf16 operands
    # with f32 accumulation, f32 softmax).
    h_ref = jnp.maximum(x @ w1_raw, 0.0)
    logits_ref = jnp.dot(
        h_ref.astype(jnp.bfloat16),
        w2_raw.astype(jnp.bfloat16),
        preferred_element_type=jnp.float32,
    )
    ref_bf16 = jax.nn.softmax(logits_ref, axis=-1)
    assert jnp.allclose(out, ref_bf16, atol=2e-3, rtol=2e-3)

    # Looser sanity check against the pure-f32 PyTorch-equivalent forward.
    ref_f32 = jax.nn.softmax(jnp.maximum(x @ w1_raw, 0.0) @ w2_raw, axis=-1)
    assert jnp.allclose(out, ref_f32, atol=2e-2, rtol=2e-2)

    # Exact normalization -> rows sum to 1 to f32 precision.
    assert jnp.allclose(jnp.sum(out, axis=-1), 1.0, atol=1e-5)

    print("KERNEL_OK")
</pallas_src>

<mosaic_0001>
module attributes {stable_mosaic.version = 11 : i64} {
  func.func @policy_kernel(%arg0: i32, %arg1: memref<256x4xf32, #tpu.memory_space<vmem>>, %arg2: memref<4x256xf32, #tpu.memory_space<vmem>>, %arg3: memref<256x128xbf16, #tpu.memory_space<vmem>>, %arg4: memref<1x128xf32, #tpu.memory_space<vmem>>, %arg5: memref<256x128xf32, #tpu.memory_space<vmem>>) attributes {dimension_semantics = [#tpu.dimension_semantics<parallel>], iteration_bounds = array<i64: 1>, scalar_prefetch = 0 : i64, scratch_operands = 0 : i64, tpu.core_type = #tpu.core_type<tc>, window_params = [{transform_indices = @transform_0, window_bounds = array<i64: 256, 4>}, {pipeline_mode = #tpu.pipeline_mode<synchronous>, transform_indices = @transform_1, window_bounds = array<i64: 4, 256>}, {pipeline_mode = #tpu.pipeline_mode<synchronous>, transform_indices = @transform_2, window_bounds = array<i64: 256, 128>}, {pipeline_mode = #tpu.pipeline_mode<synchronous>, transform_indices = @transform_3, window_bounds = array<i64: 1, 128>}, {transform_indices = @transform_4, window_bounds = array<i64: 256, 128>}]} {
    %c0 = arith.constant 0 : index
    %c0_0 = arith.constant 0 : index
    %0 = vector.load %arg1[%c0, %c0_0] : memref<256x4xf32, #tpu.memory_space<vmem>>, vector<256x4xf32>
    %1 = vector.extract_strided_slice %0 {offsets = [0, 0], sizes = [256, 1], strides = [1, 1]} : vector<256x4xf32> to vector<256x1xf32>
    %c0_1 = arith.constant 0 : index
    %c0_2 = arith.constant 0 : index
    %2 = vector.load %arg2[%c0_1, %c0_2] : memref<4x256xf32, #tpu.memory_space<vmem>>, vector<1x256xf32>
    %3 = vector.broadcast %1 : vector<256x1xf32> to vector<256x256xf32>
    %4 = vector.broadcast %2 : vector<1x256xf32> to vector<256x256xf32>
    %5 = arith.mulf %3, %4 : vector<256x256xf32>
    %6 = vector.extract_strided_slice %0 {offsets = [0, 1], sizes = [256, 1], strides = [1, 1]} : vector<256x4xf32> to vector<256x1xf32>
    %c1 = arith.constant 1 : index
    %c0_3 = arith.constant 0 : index
    %7 = vector.load %arg2[%c1, %c0_3] : memref<4x256xf32, #tpu.memory_space<vmem>>, vector<1x256xf32>
    %8 = vector.broadcast %6 : vector<256x1xf32> to vector<256x256xf32>
    %9 = vector.broadcast %7 : vector<1x256xf32> to vector<256x256xf32>
    %10 = arith.mulf %8, %9 : vector<256x256xf32>
    %11 = arith.addf %5, %10 : vector<256x256xf32>
    %12 = vector.extract_strided_slice %0 {offsets = [0, 2], sizes = [256, 1], strides = [1, 1]} : vector<256x4xf32> to vector<256x1xf32>
    %c2 = arith.constant 2 : index
    %c0_4 = arith.constant 0 : index
    %13 = vector.load %arg2[%c2, %c0_4] : memref<4x256xf32, #tpu.memory_space<vmem>>, vector<1x256xf32>
    %14 = vector.broadcast %12 : vector<256x1xf32> to vector<256x256xf32>
    %15 = vector.broadcast %13 : vector<1x256xf32> to vector<256x256xf32>
    %16 = arith.mulf %14, %15 : vector<256x256xf32>
    %17 = arith.addf %11, %16 : vector<256x256xf32>
    %18 = vector.extract_strided_slice %0 {offsets = [0, 3], sizes = [256, 1], strides = [1, 1]} : vector<256x4xf32> to vector<256x1xf32>
    %c3 = arith.constant 3 : index
    %c0_5 = arith.constant 0 : index
    %19 = vector.load %arg2[%c3, %c0_5] : memref<4x256xf32, #tpu.memory_space<vmem>>, vector<1x256xf32>
    %20 = vector.broadcast %18 : vector<256x1xf32> to vector<256x256xf32>
    %21 = vector.broadcast %19 : vector<1x256xf32> to vector<256x256xf32>
    %22 = arith.mulf %20, %21 : vector<256x256xf32>
    %23 = arith.addf %17, %22 : vector<256x256xf32>
    %cst = arith.constant 0.000000e+00 : f32
    %24 = vector.broadcast %cst : f32 to vector<256x256xf32>
    %25 = arith.maximumf %23, %24 : vector<256x256xf32>
    %26 = arith.truncf %25 : vector<256x256xf32> to vector<256x256xbf16>
    %c0_6 = arith.constant 0 : index
    %c0_7 = arith.constant 0 : index
    %27 = vector.load %arg3[%c0_6, %c0_7] : memref<256x128xbf16, #tpu.memory_space<vmem>>, vector<256x128xbf16>
    %cst_8 = arith.constant dense<0.000000e+00> : vector<256x128xf32>
    %28 = tpu.matmul %26, %27, %cst_8 {dimension_numbers = #tpu.dot_dimension_numbers<[1], [0], [0], [1], [0, 0, 1, 1], [], []>} : vector<256x256xbf16>, vector<256x128xbf16>, vector<256x128xf32> -> vector<256x128xf32>
    %c0_9 = arith.constant 0 : index
    %c0_10 = arith.constant 0 : index
    %29 = vector.load %arg4[%c0_9, %c0_10] : memref<1x128xf32, #tpu.memory_space<vmem>>, vector<1x128xf32>
    %30 = vector.broadcast %29 : vector<1x128xf32> to vector<256x128xf32>
    %31 = arith.addf %28, %30 : vector<256x128xf32>
    %cst_11 = arith.constant dense<0xFF800000> : vector<256xf32>
    %32 = vector.multi_reduction <maximumf>, %31, %cst_11 [1] : vector<256x128xf32> to vector<256xf32>
    %33 = vector.shape_cast %32 : vector<256xf32> to vector<256x1xf32>
    %34 = vector.broadcast %33 : vector<256x1xf32> to vector<256x128xf32>
    %35 = arith.subf %31, %34 : vector<256x128xf32>
    %36 = math.exp %35 : vector<256x128xf32>
    %cst_12 = arith.constant dense<0.000000e+00> : vector<256xf32>
    %37 = vector.multi_reduction <add>, %36, %cst_12 [1] : vector<256x128xf32> to vector<256xf32>
    %38 = vector.shape_cast %37 : vector<256xf32> to vector<256x1xf32>
    %39 = vector.broadcast %38 : vector<256x1xf32> to vector<256x128xf32>
    %40 = arith.divf %36, %39 : vector<256x128xf32>
    %c0_13 = arith.constant 0 : index
    %c0_14 = arith.constant 0 : index
    %41 = vector.load %arg5[%c0_13, %c0_14] : memref<256x128xf32, #tpu.memory_space<vmem>>, vector<256x128xf32>
    tpu.vector_store %arg5[%c0_13, %c0_14], %40 {strides = array<i32>} : memref<256x128xf32, #tpu.memory_space<vmem>>, vector<256x128xf32>,
    return
  }
  func.func @transform_0(%arg0: i32) -> (i32, i32) {
    %c0_i32 = arith.constant 0 : i32
    %c0_i32_0 = arith.constant 0 : i32
    return %arg0, %c0_i32 : i32, i32
  }
  func.func @transform_1(%arg0: i32) -> (i32, i32) {
    %c0_i32 = arith.constant 0 : i32
    %c0_i32_0 = arith.constant 0 : i32
    %c0_i32_1 = arith.constant 0 : i32
    return %c0_i32, %c0_i32_0 : i32, i32
  }
  func.func @transform_2(%arg0: i32) -> (i32, i32) {
    %c0_i32 = arith.constant 0 : i32
    %c0_i32_0 = arith.constant 0 : i32
    %c0_i32_1 = arith.constant 0 : i32
    return %c0_i32, %c0_i32_0 : i32, i32
  }
  func.func @transform_3(%arg0: i32) -> (i32, i32) {
    %c0_i32 = arith.constant 0 : i32
    %c0_i32_0 = arith.constant 0 : i32
    %c0_i32_1 = arith.constant 0 : i32
    return %c0_i32, %c0_i32_0 : i32, i32
  }
  func.func @transform_4(%arg0: i32) -> (i32, i32) {
    %c0_i32 = arith.constant 0 : i32
    %c0_i32_0 = arith.constant 0 : i32
    return %arg0, %c0_i32 : i32, i32
  }
}

</mosaic_0001>

<bundles_post_ra>
// kernel: policy_forward.1
= control target key start
LH: loop header
LB: loop body
LE: loop exit
PB: predicated region body
PF: predicated region fallthrough
CT: control target
= control target key end

     0   :  { %v2141_v0 = vmov 0   ;;  %v3658_v33 = vmov 1   ;;  %v3652_v34 = vmov 2   ;;  %v3654_v35 = vmov 3   ;;  %s3647_s0 = inlined_call_operand.vmem [shape: f32[256,4], index: 0, kind: input, shape index: {}]   ;;  %s3648_s2 = inlined_call_operand.vmem [shape: bf16[256,128], index: 2, kind: input, shape index: {}]   ;;  %s3649_s1 = inlined_call_operand.vmem [shape: f32[4,256], index: 1, kind: input, shape index: {}]   ;;  %s3650_s3 = inlined_call_operand.vmem [shape: f32[1,128], index: 3, kind: input, shape index: {}]   ;;  %s3651_s4 = inlined_call_operand.vmem [shape: f32[256,128], index: 4, kind: output, shape index: {}]  }
   0x1   :  { %1962 = vset.pattern.permute.xlu1 %v2141_v0  ;;  %1961 = vset.pattern.permute.xlu0 %v2141_v0  ;;  %v2173_v1 = vld [vmem:[%s3647_s0 + $0x10] sm:$0xff]  ;;  %v2178_v2 = vld [vmem:[%s3647_s0] sm:$0xff]  ;;  %v2185_v3 = vld [vmem:[%s3647_s0 + $0x18] sm:$0xff] }
   0x2   :  { %63 = vperm.xlu1 %1962, %v2173_v1   ;;  %53 = vperm.xlu0 %1961, %v2178_v2   ;;  %v2190_v4 = vld [vmem:[%s3647_s0 + $0x8] sm:$0xff]  ;;  %v2202_v6 = vld [vmem:[%s3647_s0 + $0x20] sm:$0xff]  ;;  %v2209_v7 = vld [vmem:[%s3647_s0 + $0x38] sm:$0xff] }
   0x3   :  { %v2197_v5 = vld [vmem:[%s3647_s0 + $0x28] sm:$0xff]  ;;  %v2214_v8 = vld [vmem:[%s3647_s0 + $0x30] sm:$0xff]  ;;  %v2226_v10 = vld [vmem:[%s3647_s0 + $0x40] sm:$0xff] }
   0x4   :  { %v2221_v9 = vld [vmem:[%s3647_s0 + $0x48] sm:$0xff]  ;;  %v2233_v11 = vld [vmem:[%s3647_s0 + $0x58] sm:$0xff]  ;;  %v2238_v12 = vld [vmem:[%s3647_s0 + $0x50] sm:$0xff] }
   0x5   :  { %v2245_v13 = vld [vmem:[%s3647_s0 + $0x68] sm:$0xff]  ;;  %v2250_v14 = vld [vmem:[%s3647_s0 + $0x60] sm:$0xff]  ;;  %v2257_v15 = vld [vmem:[%s3647_s0 + $0x78] sm:$0xff] }
   0x6   :  { %68 = vperm.xlu1 %1962, %v2185_v3   ;;  %58 = vperm.xlu0 %1961, %v2190_v4   ;;  %v2262_v16 = vld [vmem:[%s3647_s0 + $0x70] sm:$0xff]  ;;  %v2269_v17 = vld [vmem:[%s3647_s0 + $0x88] sm:$0xff]  ;;  %v34_v18 = vld [vmem:[%s3647_s0 + $0x80] sm:$0xff] }
   0x7   :  { %v2278_v19 = vld [vmem:[%s3647_s0 + $0x98] sm:$0xff]  ;;  %v2283_v20 = vld [vmem:[%s3647_s0 + $0x90] sm:$0xff]  ;;  %v2290_v21 = vld [vmem:[%s3647_s0 + $0xa8] sm:$0xff] }
   0x8   :  { %v2295_v22 = vld [vmem:[%s3647_s0 + $0xa0] sm:$0xff]  ;;  %v2302_v23 = vld [vmem:[%s3647_s0 + $0xb8] sm:$0xff]  ;;  %v2307_v24 = vld [vmem:[%s3647_s0 + $0xb0] sm:$0xff] }
   0x9   :  { %v2314_v25 = vld [vmem:[%s3647_s0 + $0xc8] sm:$0xff]  ;;  %v2319_v26 = vld [vmem:[%s3647_s0 + $0xc0] sm:$0xff]  ;;  %v2326_v27 = vld [vmem:[%s3647_s0 + $0xd8] sm:$0xff] }
   0xa   :  { %78 = vperm.xlu1 %1962, %v2197_v5   ;;  %73 = vperm.xlu0 %1961, %v2202_v6   ;;  %v2331_v28 = vld [vmem:[%s3647_s0 + $0xd0] sm:$0xff]  ;;  %v2338_v29 = vld [vmem:[%s3647_s0 + $0xe8] sm:$0xff]  ;;  %v2343_v30 = vld [vmem:[%s3647_s0 + $0xe0] sm:$0xff] }
   0xb   :  { %3691 = vst [vmem:[#allocation2_spill] sm:$0xff] %v2338_v29  ;;  %v2350_v31 = vld [vmem:[%s3647_s0 + $0xf8] sm:$0xff]  ;;  %v48_v32 = vld [vmem:[%s3647_s0 + $0xf0] sm:$0xff]  ;;  %v1992_v36 = vld [vmem:[%s3648_s2 + $0x40] sm:$0xff]  }
   0xc   :  { %v1993_v37 = vld [vmem:[%s3648_s2] sm:$0xff]   ;;  %1829 = vmatprep.subr.bf16.mxu0 %v1992_v36  ;;  %1941 = vmatprep.subr.bf16.mxu1 %v1992_v36  ;;  %v1994_v38 = vld [vmem:[%s3648_s2 + $0x48] sm:$0xff]   ;;  %v1996_v40 = vld [vmem:[%s3648_s2 + $0x50] sm:$0xff]  }
   0xd   :  { %1830 = vmatpush3.bf16.msra.mxu0 %v1993_v37  ;;  %1949 = vmatpush3.bf16.msra.mxu1 %v1993_v37  ;;  %v1995_v39 = vld [vmem:[%s3648_s2 + $0x8] sm:$0xff]   ;;  %v1997_v41 = vld [vmem:[%s3648_s2 + $0x10] sm:$0xff]   ;;  %v1998_v42 = vld [vmem:[%s3648_s2 + $0x58] sm:$0xff]  }
   0xe   :  { %88 = vperm.xlu1 %1962, %v2209_v7   ;;  %83 = vperm.xlu0 %1961, %v2214_v8   ;;  %v1999_v45 = vld [vmem:[%s3648_s2 + $0x18] sm:$0xff]   ;;  %v2000_v46 = vld [vmem:[%s3648_s2 + $0x60] sm:$0xff]   ;;  %v2002_v50 = vld [vmem:[%s3648_s2 + $0x68] sm:$0xff]  }
   0xf   :  { %1831 = vmatprep.subr.bf16.mxu0 %v1994_v38  ;;  %1942 = vmatprep.subr.bf16.mxu1 %v1994_v38  ;;  %v2001_v49 = vld [vmem:[%s3648_s2 + $0x20] sm:$0xff]   ;;  %v2003_v53 = vld [vmem:[%s3648_s2 + $0x28] sm:$0xff]   ;;  %v2004_v54 = vld [vmem:[%s3648_s2 + $0x70] sm:$0xff]  }
  0x10   :  { %v2005_v57 = vld [vmem:[%s3648_s2 + $0x30] sm:$0xff]   ;;  %v2006_v58 = vld [vmem:[%s3648_s2 + $0x78] sm:$0xff]  }
  0x11   :  { %1832 = vmatpush3.bf16.msra.mxu0 %v1995_v39  ;;  %1950 = vmatpush3.bf16.msra.mxu1 %v1995_v39  ;;  %v2007_v61 = vld [vmem:[%s3648_s2 + $0x38] sm:$0xff]  }
  0x12   :  { %98 = vperm.xlu1 %1962, %v2221_v9   ;;  %93 = vperm.xlu0 %1961, %v2226_v10  }
  0x13   :  { %1833 = vmatprep.subr.bf16.mxu0 %v1996_v40  ;;  %1943 = vmatprep.subr.bf16.mxu1 %v1996_v40 }
  0x15   :  { %1834 = vmatpush3.bf16.msra.mxu0 %v1997_v41  ;;  %1951 = vmatpush3.bf16.msra.mxu1 %v1997_v41 }
  0x16   :  { %108 = vperm.xlu1 %1962, %v2233_v11   ;;  %103 = vperm.xlu0 %1961, %v2238_v12  }
  0x17   :  { %1835 = vmatprep.subr.bf16.mxu0 %v1998_v42  ;;  %1944 = vmatprep.subr.bf16.mxu1 %v1998_v42 }
  0x19   :  { %1836 = vmatpush3.bf16.msra.mxu0 %v1999_v45  ;;  %1952 = vmatpush3.bf16.msra.mxu1 %v1999_v45 }
  0x1a   :  { %118 = vperm.xlu1 %1962, %v2245_v13   ;;  %113 = vperm.xlu0 %1961, %v2250_v14  }
  0x1b   :  { %1837 = vmatprep.subr.bf16.mxu0 %v2000_v46  ;;  %1945 = vmatprep.subr.bf16.mxu1 %v2000_v46 }
  0x1d   :  { %1838 = vmatpush3.bf16.msra.mxu0 %v2001_v49  ;;  %1953 = vmatpush3.bf16.msra.mxu1 %v2001_v49 }
  0x1e   :  { %128 = vperm.xlu1 %1962, %v2257_v15   ;;  %123 = vperm.xlu0 %1961, %v2262_v16  }
  0x1f   :  { %1839 = vmatprep.subr.bf16.mxu0 %v2002_v50  ;;  %1946 = vmatprep.subr.bf16.mxu1 %v2002_v50 }
  0x21   :  { %1840 = vmatpush3.bf16.msra.mxu0 %v2003_v53  ;;  %1954 = vmatpush3.bf16.msra.mxu1 %v2003_v53 }
  0x22   :  { %138 = vperm.xlu1 %1962, %v2269_v17   ;;  %133 = vperm.xlu0 %1961, %v34_v18  }
  0x23   :  { %1841 = vmatprep.subr.bf16.mxu0 %v2004_v54  ;;  %1947 = vmatprep.subr.bf16.mxu1 %v2004_v54 }
  0x25   :  { %1842 = vmatpush3.bf16.msra.mxu0 %v2005_v57  ;;  %1955 = vmatpush3.bf16.msra.mxu1 %v2005_v57 }
  0x26   :  { %148 = vperm.xlu1 %1962, %v2278_v19   ;;  %143 = vperm.xlu0 %1961, %v2283_v20  }
  0x27   :  { %1843 = vmatprep.subr.bf16.mxu0 %v2006_v58  ;;  %1948 = vmatprep.subr.bf16.mxu1 %v2006_v58  ;;  %v212_v58 = vlaneseq }
  0x29   :  { %1844 = vmatpush3.bf16.msra.mxu0 %v2007_v61  ;;  %1956 = vmatpush3.bf16.msra.mxu1 %v2007_v61 }
  0x2a   :  { %158 = vperm.xlu1 %1962, %v2290_v21   ;;  %153 = vperm.xlu0 %1961, %v2295_v22  }
  0x2e   :  { %168 = vperm.xlu1 %1962, %v2302_v23   ;;  %163 = vperm.xlu0 %1961, %v2307_v24  }
  0x32   :  { %178 = vperm.xlu1 %1962, %v2314_v25   ;;  %173 = vperm.xlu0 %1961, %v2319_v26  }
  0x36   :  { %188 = vperm.xlu1 %1962, %v2326_v27   ;;  %183 = vperm.xlu0 %1961, %v2331_v28  }
  0x3a   :  { %198 = vperm.xlu1 %1962, %v2338_v29   ;;  %193 = vperm.xlu0 %1961, %v2343_v30  }
  0x3e   :  { %208 = vperm.xlu1 %1962, %v2350_v31   ;;  %203 = vperm.xlu0 %1961, %v48_v32  }
  0x42   :  { %1963 = vset.pattern.permute.xlu1 %v3658_v33  ;;  %1965 = vset.pattern.permute.xlu0 %v3652_v34 }
  0x43   :  { %293 = vperm.xlu1 %1963, %v2190_v4   ;;  %562 = vperm.xlu0 %1965, %v2190_v4  }
  0x47   :  { %353 = vperm.xlu1 %1963, %v34_v18   ;;  %566 = vperm.xlu0 %1965, %v2173_v1  }
  0x4b   :  { %1964 = vset.pattern.permute.xlu1 %v3652_v34  ;;  %634 = vperm.xlu0 %1965, %v2278_v19  }
  0x4c   :  { %558 = vperm.xlu1 %1964, %v2178_v2  }
  0x4f   :  { %578 = vperm.xlu0 %1965, %v2197_v5  }
  0x50   :  { %622 = vperm.xlu1 %1964, %v34_v18  }
  0x53   :  { %582 = vperm.xlu0 %1965, %v2214_v8  }
  0x54   :  { %626 = vperm.xlu1 %1964, %v2269_v17  }
  0x57   :  { %650 = vperm.xlu0 %1965, %v2302_v23  }
  0x58   :  { %1966 = vset.pattern.permute.xlu1 %v3654_v35 }
  0x59   :  { %831 = vperm.xlu1 %1966, %v2190_v4  }
  0x5b   :  { %1975 = vset.pattern.permute.xlu0 %v3654_v35 }
  0x5c   :  { %827 = vperm.xlu0 %1975, %v2178_v2  }
  0x5d   :  { %891 = vperm.xlu1 %1966, %v34_v18  }
  0x60   :  { %895 = vperm.xlu0 %1975, %v2269_v17  }
  0x61   :  { %1967 = vset.pattern.permute.xlu1 %v3658_v33 }
  0x62   :  { %297 = vperm.xlu1 %1967, %v2173_v1  }
  0x64   :  { %839 = vperm.xlu0 %1975, %v2185_v3  }
  0x66   :  { %361 = vperm.xlu1 %1967, %v2283_v20  }
  0x68   :  { %843 = vperm.xlu0 %1975, %v2202_v6  }
  0x6a   :  { %365 = vperm.xlu1 %1967, %v2278_v19  }
  0x6c   :  { %911 = vperm.xlu0 %1975, %v2290_v21  }
  0x6e   :  { %1968 = vset.pattern.permute.xlu1 %v3652_v34 }
  0x6f   :  { %570 = vperm.xlu1 %1968, %v2185_v3  }
  0x70   :  { %855 = vperm.xlu0 %1975, %v2209_v7  }
  0x73   :  { %630 = vperm.xlu1 %1968, %v2283_v20  }
  0x74   :  { %859 = vperm.xlu0 %1975, %v2226_v10  }
  0x77   :  { %1969 = vset.pattern.permute.xlu1 %v3654_v35 }
  0x78   :  { %835 = vperm.xlu1 %1969, %v2173_v1   ;;  %927 = vperm.xlu0 %1975, %v2314_v25  }
  0x7c   :  { %899 = vperm.xlu1 %1969, %v2283_v20   ;;  %871 = vperm.xlu0 %1975, %v2233_v11  }
  0x80   :  { %903 = vperm.xlu1 %1969, %v2278_v19   ;;  %875 = vperm.xlu0 %1975, %v2250_v14  }
  0x81   :  { %v2413_v43 = vpop.permute.xlu1 %63  ;;  %v2415_v44 = vpop.permute.xlu0 %53 }
  0x84   :  { %1970 = vset.pattern.permute.xlu1 %v3658_v33  ;;  %943 = vperm.xlu0 %1975, %v2338_v29  }
  0x85   :  { %v2425_v47 = vpop.permute.xlu1 %68  ;;  %309 = vperm.xlu1 %1970, %v2197_v5   ;;  %v2428_v48 = vpop.permute.xlu0 %58 }
  0x88   :  { %1986 = vset.pattern.permute.xlu0 %v3658_v33 }
  0x89   :  { %v2437_v51 = vpop.permute.xlu1 %78  ;;  %369 = vperm.xlu1 %1970, %v2295_v22   ;;  %289 = vperm.xlu0 %1986, %v2178_v2   ;;  %v2441_v52 = vpop.permute.xlu0 %73 }
  0x8d   :  { %v2449_v55 = vpop.permute.xlu1 %88  ;;  %1971 = vset.pattern.permute.xlu1 %v3652_v34  ;;  %357 = vperm.xlu0 %1986, %v2269_v17   ;;  %v2453_v56 = vpop.permute.xlu0 %83 }
  0x8e   :  { %3692 = vst [vmem:[#allocation3_spill] sm:$0xff] %v2449_v55  ;;  %3693 = vst [vmem:[#allocation4_spill] sm:$0xff] %v2453_v56  ;;  %574 = vperm.xlu1 %1971, %v2202_v6  }
  0x91   :  { %v2462_v59 = vpop.permute.xlu1 %98  ;;  %301 = vperm.xlu0 %1986, %v2185_v3   ;;  %v2465_v60 = vpop.permute.xlu0 %93 }
  0x92   :  { %3694 = vst [vmem:[#allocation5_spill] sm:$0xff] %v2462_v59  ;;  %3695 = vst [vmem:[#allocation6_spill] sm:$0xff] %v2465_v60  ;;  %638 = vperm.xlu1 %1971, %v2295_v22  }
  0x95   :  { %v2471_v62 = vpop.permute.xlu1 %108  ;;  %305 = vperm.xlu0 %1986, %v2202_v6   ;;  %v2474_v63 = vpop.permute.xlu0 %103 }
  0x96   :  { %3696 = vst [vmem:[#allocation7_spill] sm:$0xff] %v2471_v62  ;;  %3697 = vst [vmem:[#allocation8_spill] sm:$0xff] %v2474_v63  ;;  %642 = vperm.xlu1 %1971, %v2290_v21  }
  0x99   :  { %v2477_v0 = vpop.permute.xlu1 %118  ;;  %373 = vperm.xlu0 %1986, %v2290_v21   ;;  %v2480_v1 = vpop.permute.xlu0 %113 }
  0x9a   :  { %3698 = vst [vmem:[#allocation9_spill] sm:$0xff] %v2477_v0  ;;  %3699 = vst [vmem:[#allocation10_spill] sm:$0xff] %v2480_v1  ;;  %1972 = vset.pattern.permute.xlu1 %v3654_v35 }
  0x9b   :  { %847 = vperm.xlu1 %1972, %v2197_v5  }
  0x9d   :  { %v2484_v2 = vpop.permute.xlu1 %128  ;;  %317 = vperm.xlu0 %1986, %v2209_v7   ;;  %v2487_v3 = vpop.permute.xlu0 %123 }
  0x9e   :  { %3700 = vst [vmem:[#allocation11_spill] sm:$0xff] %v2484_v2  ;;  %3701 = vst [vmem:[#allocation12_spill] sm:$0xff] %v2487_v3 }
  0x9f   :  { %907 = vperm.xlu1 %1972, %v2295_v22  }
  0xa1   :  { %v2490_v4 = vpop.permute.xlu1 %138  ;;  %321 = vperm.xlu0 %1986, %v2226_v10   ;;  %v2493_v6 = vpop.permute.xlu0 %133 }
  0xa3   :  { %1973 = vset.pattern.permute.xlu1 %v3658_v33 }
  0xa4   :  { %313 = vperm.xlu1 %1973, %v2214_v8  }
  0xa5   :  { %v2497_v17 = vpop.permute.xlu1 %148  ;;  %389 = vperm.xlu0 %1986, %v2314_v25   ;;  %v2500_v5 = vpop.permute.xlu0 %143 }
  0xa8   :  { %377 = vperm.xlu1 %1973, %v2307_v24  }
  0xa9   :  { %v2503_v18 = vpop.permute.xlu1 %158  ;;  %333 = vperm.xlu0 %1986, %v2233_v11   ;;  %v2506_v19 = vpop.permute.xlu0 %153 }
  0xac   :  { %381 = vperm.xlu1 %1973, %v2302_v23  }
  0xad   :  { %v2509_v20 = vpop.permute.xlu1 %168  ;;  %337 = vperm.xlu0 %1986, %v2250_v14   ;;  %v2512_v21 = vpop.permute.xlu0 %163 }
  0xae   :  { %3702 = vst [vmem:[#allocation13_spill] sm:$0xff] %v2509_v20  ;;  %3703 = vst [vmem:[#allocation14_spill] sm:$0xff] %v2512_v21 }
  0xb0   :  { %1974 = vset.pattern.permute.xlu1 %v3652_v34 }
  0xb1   :  { %v2515_v22 = vpop.permute.xlu1 %178  ;;  %586 = vperm.xlu1 %1974, %v2209_v7   ;;  %405 = vperm.xlu0 %1986, %v2338_v29   ;;  %v2519_v32 = vpop.permute.xlu0 %173 }
  0xb2   :  { %3704 = vst [vmem:[#allocation15_spill] sm:$0xff] %v2515_v22  ;;  %3705 = vst [vmem:[#allocation16_spill] sm:$0xff] %v2519_v32 }
  0xb5   :  { %v2521_v36 = vpop.permute.xlu1 %188  ;;  %646 = vperm.xlu1 %1974, %v2307_v24   ;;  %349 = vperm.xlu0 %1986, %v2257_v15   ;;  %v2525_v37 = vpop.permute.xlu0 %183 }
  0xb6   :  { %3706 = vst [vmem:[#allocation17_spill] sm:$0xff] %v2521_v36  ;;  %3707 = vst [vmem:[#allocation18_spill] sm:$0xff] %v2525_v37  ;;  %v1811_v37 = vld [vmem:[%s3649_s1 + $0x3] ss:$4 sm:$0x3] }
  0xb9   :  { %v2527_v38 = vpop.permute.xlu1 %198  ;;  %1976 = vset.pattern.permute.xlu1 %v3654_v35  ;;  %v2530_v39 = vpop.permute.xlu0 %193  ;;  %1988 = vset.pattern.permute.xlu0 %v3652_v34 }
  0xba   :  { %3708 = vst [vmem:[#allocation19_spill] sm:$0xff] %v2527_v38  ;;  %3709 = vst [vmem:[#allocation20_spill] sm:$0xff] %v2530_v39  ;;  %851 = vperm.xlu1 %1976, %v2214_v8   ;;  %594 = vperm.xlu0 %1988, %v2221_v9  }
  0xbd   :  { %v2535_v7 = vpop.permute.xlu1 %208  ;;  %v2537_v40 = vpop.permute.xlu0 %203 }
  0xbe   :  { %3710 = vst [vmem:[#allocation21_spill] sm:$0xff] %v2535_v7  ;;  %3711 = vst [vmem:[#allocation22_spill] sm:$0xff] %v2537_v40  ;;  %915 = vperm.xlu1 %1976, %v2307_v24   ;;  %598 = vperm.xlu0 %1988, %v2238_v12  }
  0xc2   :  { %v2541_v41 = vpop.permute.xlu1 %293  ;;  %919 = vperm.xlu1 %1976, %v2302_v23   ;;  %v2544_v42 = vpop.permute.xlu0 %562  ;;  %666 = vperm.xlu0 %1988, %v2326_v27  }
  0xc6   :  { %v2547_v45 = vpop.permute.xlu1 %353  ;;  %1977 = vset.pattern.permute.xlu1 %v3658_v33  ;;  %v2550_v8 = vpop.permute.xlu0 %566  ;;  %610 = vperm.xlu0 %1988, %v2245_v13  }
  0xc7   :  { %325 = vperm.xlu1 %1977, %v2221_v9  }
  0xca   :  { %v2554_v24 = vpop.permute.xlu0 %634  ;;  %614 = vperm.xlu0 %1988, %v2262_v16  }
  0xcb   :  { %385 = vperm.xlu1 %1977, %v2319_v26   ;;  %v2557_v46 = vpop.permute.xlu1 %558 }
  0xce   :  { %v2560_v23 = vpop.permute.xlu0 %578  ;;  %682 = vperm.xlu0 %1988, %v2350_v31  }
  0xcf   :  { %1978 = vset.pattern.permute.xlu1 %v3652_v34  ;;  %v2563_v49 = vpop.permute.xlu1 %622 }
  0xd0   :  { %590 = vperm.xlu1 %1978, %v2226_v10  }
  0xd2   :  { %v2567_v50 = vpop.permute.xlu0 %582  ;;  %1991 = vset.pattern.permute.xlu0 %v3654_v35 }
  0xd3   :  { %3712 = vst [vmem:[#allocation23_spill] sm:$0xff] %v2567_v50  ;;  %v2569_v53 = vpop.permute.xlu1 %626  ;;  %887 = vperm.xlu0 %1991, %v2257_v15  }
  0xd4   :  { %654 = vperm.xlu1 %1978, %v2319_v26  }
  0xd6   :  { %v2574_v16 = vpop.permute.xlu0 %650 }
  0xd7   :  { %3713 = vst [vmem:[#allocation24_spill] sm:$0xff] %v2574_v16 }
  0xd8   :  { %658 = vperm.xlu1 %1978, %v2314_v25   ;;  %v2577_v54 = vpop.permute.xlu1 %831  ;;  %v213_v25 = vshrl.u32 %v212_v58, 7  ;;  %v1809_v58 = vld [vmem:[%s3649_s1 + $0x1] ss:$4 sm:$0x3] }
  0xda   :  { %v214_v7 = vsub.s32 0, %v213_v25 }
  0xdb   :  { %v2579_v57 = vpop.permute.xlu0 %827 }
  0xdc   :  { %1979 = vset.pattern.permute.xlu1 %v3654_v35  ;;  %v2582_v10 = vpop.permute.xlu1 %891  ;;  %v2613_v0 = vrot.slane %v1809_v58, %v214_v7  ;;  %v2632_v22 = vrot.slane %v1811_v37, %v214_v7 }
  0xdd   :  { %863 = vperm.xlu1 %1979, %v2221_v9   ;;  %v218_v9 = vsub.s32 1, %v213_v25  ;;  %v1810_v25 = vld [vmem:[%s3649_s1 + $0x2] ss:$4 sm:$0x3] }
  0xde   :  { %v429_v21 = vmul.f32 %v2613_v0, %v2541_v41 }
  0xdf   :  { %v2585_v31 = vpop.permute.xlu0 %895  ;;  %v2621_v36 = vrot.slane %v1809_v58, %v218_v9  ;;  %v2630_v32 = vrot.slane %v1810_v25, %v218_v9  ;;  %v2634_v59 = vrot.slane %v1811_v37, %v218_v9 }
  0xe1   :  { %923 = vperm.xlu1 %1979, %v2319_v26   ;;  %v2588_v15 = vpop.permute.xlu1 %297  ;;  %v50_v26 = vld [vmem:[%s3649_s1] ss:$4 sm:$0x3] }
  0xe2   :  { %v2609_v3 = vrot.slane %v50_v26, %v214_v7  ;;  %v2611_v39 = vrot.slane %v50_v26, %v218_v9  ;;  %v2628_v26 = vrot.slane %v1810_v25, %v214_v7  ;;  %v3717_v25 = vmov 2  }
  0xe3   :  { %v2590_v61 = vpop.permute.xlu0 %839 }
  0xe4   :  { %3714 = vst [vmem:[#allocation25_spill] sm:$0xff] %v2609_v3  ;;  %3715 = vst [vmem:[#allocation26_spill] sm:$0xff] %v2611_v39  ;;  %v2638_v60 = vmul.f32 %v2609_v3, %v2413_v43  ;;  %v2642_v58 = vmul.f32 %v2611_v39, %v2413_v43  ;;  %v224_v16 = vmul.f32 %v2609_v3, %v2428_v48 }
  0xe5   :  { %1980 = vset.pattern.permute.xlu1 %v3658_v33  ;;  %v2593_v34 = vpop.permute.xlu1 %361  ;;  %v2650_v7 = vmul.f32 %v2609_v3, %v2415_v44  ;;  %v2654_v37 = vmul.f32 %v2611_v39, %v2415_v44  ;;  %v225_v9 = vmul.f32 %v2611_v39, %v2428_v48  ;;  %v430_v43 = vmul.f32 %v2621_v36, %v2541_v41 }
  0xe6   :  { %329 = vperm.xlu1 %1980, %v2238_v12   ;;  %v2665_v50 = vmul.f32 %v2609_v3, %v2425_v47  ;;  %v2673_v44 = vmul.f32 %v2609_v3, %v2437_v51  ;;  %v2677_v48 = vmul.f32 %v2611_v39, %v2437_v51  ;;  %v2684_v2 = vmul.f32 %v2609_v3, %v2441_v52 }
  0xe7   :  { %v2596_v35 = vpop.permute.xlu0 %843  ;;  %v2692_v56 = vmul.f32 %v2609_v3, %v2490_v4  ;;  %v2696_v51 = vmul.f32 %v2611_v39, %v2490_v4  ;;  %v493_v38 = vadd.f32 %v429_v21, %v224_v16  ;;  %v698_v55 = vmul.f32 %v2628_v26, %v2544_v42 }
  0xe8   :  { %3718 = vst [vmem:[#allocation28_spill] sm:$0xff] %v2665_v50  ;;  %3721 = vst [vmem:[#allocation31_spill] sm:$0xff] %v2684_v2  ;;  %v261_v1 = vmul.f32 %v2611_v39, %v2497_v17  ;;  %v494_v29 = vadd.f32 %v430_v43, %v225_v9  ;;  %v699_v4 = vmul.f32 %v2630_v32, %v2544_v42 }
  0xe9   :  { %v2598_v40 = vpop.permute.xlu1 %365  ;;  %v459_v21 = vmul.f32 %v2613_v0, %v2547_v45  ;;  %v460_v16 = vmul.f32 %v2621_v36, %v2547_v45  ;;  %v2731_v42 = vmul.f32 %v2609_v3, %v2503_v18  ;;  %v2739_v43 = vmul.f32 %v2609_v3, %v2506_v19 }
  0xea   :  { %393 = vperm.xlu1 %1980, %v2331_v28   ;;  %v2743_v45 = vmul.f32 %v2611_v39, %v2506_v19  ;;  %v762_v2 = vadd.f32 %v698_v55, %v493_v38  ;;  %v968_v19 = vmul.f32 %v2634_v59, %v2577_v54  ;;  %v2768_v50 = vmul.f32 %v2628_v26, %v2557_v46 }
  0xeb   :  { %v2607_v33 = vpop.permute.xlu0 %911  ;;  %3724 = vst [vmem:[#allocation34_spill] sm:$0xff] %v2731_v42  ;;  %3726 = vst [vmem:[#allocation36_spill] sm:$0xff] %v2739_v43  ;;  %v729_v42 = vmul.f32 %v2630_v32, %v2563_v49  ;;  %v3728_v43 = vmov 3  }
  0xec   :  { %3727 = vst [vmem:[#allocation37_spill] sm:$0xff] %v2743_v45  ;;  %v997_v45 = vmul.f32 %v2632_v22, %v2582_v10 }
  0xee   :  { %397 = vperm.xlu1 %1980, %v2326_v27   ;;  %v2624_v63 = vpop.permute.xlu1 %570 }
  0xef   :  { %v2626_v62 = vpop.permute.xlu0 %855 }
  0xf0   :  { %3716 = vst [vmem:[#allocation27_spill] sm:$0xff] %v2626_v62  ;;  %v2669_v62 = vmul.f32 %v2611_v39, %v2425_v47  ;;  %v2688_v47 = vmul.f32 %v2611_v39, %v2441_v52  ;;  %v2706_v52 = vmul.f32 %v2609_v3, %v2497_v17 }
  0xf2   :  { %1981 = vset.pattern.permute.xlu1 %v3717_v25  ;;  %v2661_v20 = vpop.permute.xlu1 %630  ;;  %3719 = vst [vmem:[#allocation29_spill] sm:$0xff] %v2669_v62  ;;  %3722 = vst [vmem:[#allocation32_spill] sm:$0xff] %v2688_v47  ;;  %v2714_v47 = vmul.f32 %v2609_v3, %v2500_v5  ;;  %v728_v62 = vmul.f32 %v2628_v26, %v2563_v49 }
  0xf3   :  { %602 = vperm.xlu1 %1981, %v2233_v11   ;;  %v2680_v41 = vpop.permute.xlu0 %859  ;;  %v254_v11 = vmul.f32 %v2609_v3, %v2493_v6  ;;  %v967_v3 = vmul.f32 %v2632_v22, %v2577_v54  ;;  %v735_v54 = vmul.f32 %v2630_v32, %v2554_v24 }
  0xf4   :  { %3720 = vst [vmem:[#allocation30_spill] sm:$0xff] %v2680_v41  ;;  %v255_v41 = vmul.f32 %v2611_v39, %v2493_v6  ;;  %v2718_v6 = vmul.f32 %v2611_v39, %v2500_v5  ;;  %v2735_v5 = vmul.f32 %v2611_v39, %v2503_v18  ;;  %v701_v18 = vmul.f32 %v2630_v32, %v2550_v8 }
  0xf5   :  { %v763_v39 = vadd.f32 %v699_v4, %v494_v29  ;;  %v523_v55 = vadd.f32 %v459_v21, %v254_v11  ;;  %v734_v29 = vmul.f32 %v2628_v26, %v2554_v24  ;;  %v432_v4 = vmul.f32 %v2621_v36, %v2588_v15 }
  0xf6   :  { %3725 = vst [vmem:[#allocation35_spill] sm:$0xff] %v2735_v5  ;;  %v524_v38 = vadd.f32 %v460_v16, %v255_v41  ;;  %v998_v5 = vmul.f32 %v2634_v59, %v2582_v10  ;;  %v431_v41 = vmul.f32 %v2613_v0, %v2588_v15  ;;  %v2779_v10 = vmul.f32 %v2630_v32, %v2557_v46 }
  0xf7   :  { %662 = vperm.xlu1 %1981, %v2331_v28   ;;  %v2725_v17 = vpop.permute.xlu1 %835  ;;  %v2727_v9 = vpop.permute.xlu0 %927  ;;  %v792_v11 = vadd.f32 %v728_v62, %v523_v55  ;;  %v2785_v16 = vmul.f32 %v2628_v26, %v2560_v23  ;;  %v466_v24 = vmul.f32 %v2621_v36, %v2598_v40  ;;  %v2799_v62 = vmul.f32 %v2628_v26, %v2569_v53 }
  0xf8   :  { %3723 = vst [vmem:[#allocation33_spill] sm:$0xff] %v2727_v9  ;;  %v700_v9 = vmul.f32 %v2628_v26, %v2550_v8  ;;  %v793_v21 = vadd.f32 %v729_v42, %v524_v38  ;;  %v465_v55 = vmul.f32 %v2613_v0, %v2598_v40  ;;  %v2830_v38 = vmul.f32 %v2632_v22, %v2585_v31 }
  0xf9   :  { %v2801_v46 = vadd.f32 %v997_v45, %v792_v11  ;;  %v495_v45 = vadd.f32 %v431_v41, %v2638_v60  ;;  %v2840_v41 = vmul.f32 %v2632_v22, %v2590_v61 }
  0xfa   :  { %v529_v40 = vadd.f32 %v465_v55, %v2706_v52  ;;  %v2873_v52 = vmul.f32 %v2632_v22, %v2607_v33  ;;  %v702_v55 = vmul.f32 %v2628_v26, %v2624_v63 }
  0xfb   :  { %1982 = vset.pattern.permute.xlu1 %v3728_v43  ;;  %v2762_v49 = vpop.permute.xlu1 %899  ;;  %v2764_v8 = vpop.permute.xlu0 %871  ;;  %v2791_v43 = vadd.f32 %v968_v19, %v763_v39  ;;  %v2813_v39 = vmul.f32 %v2632_v22, %v2579_v57  ;;  %v496_v19 = vadd.f32 %v432_v4, %v2642_v58  ;;  %v2836_v58 = vmul.f32 %v2634_v59, %v2585_v31 }
  0xfc   :  { %3729 = vst [vmem:[#allocation38_spill] sm:$0xff] %v2764_v8  ;;  %867 = vperm.xlu1 %1982, %v2238_v12   ;;  %v2787_v8 = vadd.f32 %v967_v3, %v762_v2  ;;  %v2795_v12 = vmul.f32 %v2630_v32, %v2560_v23  ;;  %v2805_v2 = vadd.f32 %v998_v5, %v793_v21 }
  0xfd   :  { %v2809_v3 = vmul.f32 %v2630_v32, %v2569_v53  ;;  %v2817_v23 = vmul.f32 %v2634_v59, %v2579_v57  ;;  %v463_v5 = vmul.f32 %v2613_v0, %v2593_v34  ;;  %v464_v53 = vmul.f32 %v2621_v36, %v2593_v34 }
  0xfe   :  { %v530_v57 = vadd.f32 %v466_v24, %v261_v1  ;;  %v2848_v1 = vmul.f32 %v2634_v59, %v2590_v61  ;;  %v733_v4 = vmul.f32 %v2630_v32, %v2661_v20  ;;  %v764_v21 = vadd.f32 %v700_v9, %v495_v45 }
  0xff   :  { %v904_v15 = vpop.permute.xlu1 %903  ;;  %v2803_v42 = vpop.permute.xlu0 %875  ;;  %v528_v60 = vadd.f32 %v464_v53, %v2718_v6  ;;  %v765_v11 = vadd.f32 %v701_v18, %v496_v19  ;;  %v969_v61 = vmul.f32 %v2632_v22, %v2725_v17  ;;  %v1002_v9 = vmul.f32 %v2634_v59, %v2762_v49 }
 0x100   :  { %3730 = vst [vmem:[#allocation39_spill] sm:$0xff] %v2803_v42  ;;  %931 = vperm.xlu1 %1982, %v2331_v28   ;;  %v1004_v31 = vmul.f32 %v2634_v59, %v904_v15  ;;  %v527_v28 = vadd.f32 %v463_v5, %v2714_v47  ;;  %v799_v45 = vadd.f32 %v735_v54, %v530_v57  ;;  %v3732_v5 = vmov 1  }
 0x101   :  { %v2869_v47 = vmul.f32 %v2634_v59, %v2596_v35  ;;  %v732_v6 = vmul.f32 %v2628_v26, %v2661_v20  ;;  %v797_v18 = vadd.f32 %v733_v4, %v528_v60  ;;  %v1003_v54 = vmul.f32 %v2632_v22, %v904_v15 }
 0x102   :  { %v1068_v19 = vadd.f32 %v1004_v31, %v799_v45  ;;  %v798_v57 = vadd.f32 %v734_v29, %v529_v40  ;;  %v1001_v15 = vmul.f32 %v2632_v22, %v2762_v49  ;;  %v703_v31 = vmul.f32 %v2630_v32, %v2624_v63 }
 0x103   :  { %v2842_v34 = vpop.permute.xlu0 %943  ;;  %v1066_v4 = vadd.f32 %v1002_v9, %v797_v18  ;;  %v796_v45 = vadd.f32 %v732_v6, %v527_v28 }
 0x104   :  { %3731 = vst [vmem:[#allocation40_spill] sm:$0xff] %v2842_v34  ;;  %935 = vperm.xlu1 %1982, %v2326_v27   ;;  %v310_v24 = vpop.permute.xlu1 %309  ;;  %v970_v34 = vmul.f32 %v2634_v59, %v2725_v17  ;;  %v2865_v27 = vmul.f32 %v2632_v22, %v2596_v35  ;;  %v2879_v17 = vmul.f32 %v2634_v59, %v2607_v33 }
 0x105   :  { %v2888_v33 = vadd.f32 %v969_v61, %v764_v21  ;;  %v438_v21 = vmul.f32 %v2621_v36, %v310_v24 }
 0x106   :  { %v2890_v60 = vadd.f32 %v970_v34, %v765_v11  ;;  %v1132_v11 = vmax.f32 %v1068_v19, 0.0 }
 0x108   :  { %1983 = vset.pattern.permute.xlu1 %v3732_v5  ;;  %v370_v53 = vpop.permute.xlu1 %369  ;;  %v290_v35 = vpop.permute.xlu0 %289  ;;  %v2898_v5 = vadd.f32 %v1003_v54, %v798_v57  ;;  %v1098_v28 = vmax.f32 %v2890_v60, 0.0 }
 0x109   :  { %v427_v42 = vmul.f32 %v2613_v0, %v290_v35  ;;  %v428_v20 = vmul.f32 %v2621_v36, %v290_v35  ;;  %341 = vperm.xlu1 %1983, %v2245_v13   ;;  %v437_v13 = vmul.f32 %v2613_v0, %v310_v24  ;;  %v1097_v24 = vmax.f32 %v2888_v33, 0.0 }
 0x10a   :  { %v502_v35 = vadd.f32 %v438_v21, %v2677_v48  ;;  %v3735_v21 = vmax.f32 %v2791_v43, 0.0 }
 0x10b   :  { %v491_v29 = vadd.f32 %v427_v42, %v2650_v7  ;;  %v492_v40 = vadd.f32 %v428_v20, %v2654_v37  ;;  %v2907_v37 = vadd.f32 %v1001_v15, %v796_v45  ;;  %v1130_v42 = vmax.f32 %v1066_v4, 0.0 }
 0x10c   :  { %v358_v34 = vpop.permute.xlu0 %357  ;;  %v501_v19 = vadd.f32 %v437_v13, %v2673_v44  ;;  %v1131_v20 = vmax.f32 %v2898_v5, 0.0  ;;  %v468_v44 = vmul.f32 %v2621_v36, %v370_v53  ;;  %v3747_v5 = vmov 1  }
 0x10d   :  { %v760_v61 = vadd.f32 %v2768_v50, %v491_v29  ;;  %v461_v49 = vmul.f32 %v2613_v0, %v358_v34  ;;  %v462_v9 = vmul.f32 %v2621_v36, %v358_v34  ;;  %401 = vperm.xlu1 %1983, %v2343_v30   ;;  %v575_v63 = vpop.permute.xlu1 %574  ;;  %v761_v7 = vadd.f32 %v2779_v10, %v492_v40  ;;  %v3733_v29 = vld [vmem:[#allocation28_spill] sm:$0xff] }
 0x10e   :  { %v1176_v57 = vpack.c.bf16 %v1132_v11, %v1130_v42 }
 0x10f   :  { %v525_v6 = vadd.f32 %v461_v49, %v2692_v56  ;;  %v526_v50 = vadd.f32 %v462_v9, %v2696_v51  ;;  %v1030_v18 = vadd.f32 %v2817_v23, %v761_v7  ;;  %v1029_v54 = vadd.f32 %v2813_v39, %v760_v61 }
 0x110   :  { %v302_v10 = vpop.permute.xlu0 %301  ;;  %v467_v39 = vmul.f32 %v2613_v0, %v370_v53  ;;  %v3736_v49 = vmax.f32 %v2787_v8, 0.0  ;;  %v771_v7 = vadd.f32 %v2795_v12, %v502_v35  ;;  %v3739_v12 = vld [vmem:[#allocation32_spill] sm:$0xff] }
 0x111   :  { %v794_v15 = vadd.f32 %v2799_v62, %v525_v6  ;;  %v433_v4 = vmul.f32 %v2613_v0, %v302_v10  ;;  %v434_v56 = vmul.f32 %v2621_v36, %v302_v10  ;;  %1984 = vset.pattern.permute.xlu1 %v3717_v25  ;;  %v639_v51 = vpop.permute.xlu1 %638  ;;  %v1094_v23 = vmax.f32 %v1030_v18, 0.0  ;;  %v3734_v62 = vld [vmem:[#allocation29_spill] sm:$0xff]  ;;  %v3737_v18 = vld [vmem:[#allocation36_spill] sm:$0xff] }
 0x112   :  { %606 = vperm.xlu1 %1984, %v2250_v14   ;;  %v1093_v48 = vmax.f32 %v1029_v54, 0.0  ;;  %v795_v45 = vadd.f32 %v2809_v3, %v526_v50  ;;  %v770_v14 = vadd.f32 %v2785_v16, %v501_v19  ;;  %v705_v54 = vmul.f32 %v2630_v32, %v575_v63  ;;  %v3738_v16 = vld [vmem:[#allocation31_spill] sm:$0xff] }
 0x113   :  { %v497_v40 = vadd.f32 %v433_v4, %v3733_v29  ;;  %v498_v13 = vadd.f32 %v434_v56, %v3734_v62  ;;  %v1158_v34 = vpack.c.bf16 %v3735_v21, %v1094_v23  ;;  %v1063_v11 = vadd.f32 %v2830_v38, %v794_v15 }
 0x114   :  { %v306_v61 = vpop.permute.xlu0 %305  ;;  %v1157_v9 = vpack.c.bf16 %v3736_v49, %v1093_v48  ;;  %v1064_v53 = vadd.f32 %v2836_v58, %v795_v45  ;;  %v531_v38 = vadd.f32 %v467_v39, %v3737_v18  ;;  %v704_v10 = vmul.f32 %v2628_v26, %v575_v63  ;;  %v3742_v63 = vld [vmem:[#allocation2_spill] sm:$0xff] }
 0x115   :  { %v766_v3 = vadd.f32 %v702_v55, %v497_v40  ;;  %v767_v42 = vadd.f32 %v703_v31, %v498_v13  ;;  %v435_v6 = vmul.f32 %v2613_v0, %v306_v61  ;;  %v436_v50 = vmul.f32 %v2621_v36, %v306_v61  ;;  %v643_v43 = vpop.permute.xlu1 %642  ;;  %1356 = vmatprep.mubr.bf16.mxu0 %v1158_v34  ;;  %v3743_v34 = vld [vmem:[#allocation34_spill] sm:$0xff] }
 0x116   :  { %670 = vperm.xlu1 %1984, %v2343_v30   ;;  %1357 = vmatmul.mubr.bf16.vlgmr.msra.gmra.mrb[0].mxu0 %v1157_v9  ;;  %v1128_v8 = vmax.f32 %v1064_v53, 0.0  ;;  %v1127_v58 = vmax.f32 %v1063_v11, 0.0  ;;  %v736_v15 = vmul.f32 %v2628_v26, %v639_v51  ;;  %v3740_v56 = vmax.f32 %v2805_v2, 0.0  ;;  %v3745_v9 = vld [vmem:[#allocation37_spill] sm:$0xff] }
 0x117   :  { %v499_v19 = vadd.f32 %v435_v6, %v3738_v16  ;;  %v500_v55 = vadd.f32 %v436_v50, %v3739_v12  ;;  %v1036_v31 = vadd.f32 %v2848_v1, %v767_v42  ;;  %v1035_v35 = vadd.f32 %v2840_v41, %v766_v3 }
 0x118   :  { %v374_v4 = vpop.permute.xlu0 %373  ;;  %v1174_v23 = vpack.c.bf16 %v1128_v8, %v3740_v56  ;;  %v3741_v39 = vmax.f32 %v2801_v46, 0.0  ;;  %v737_v45 = vmul.f32 %v2630_v32, %v639_v51  ;;  %v739_v41 = vmul.f32 %v2630_v32, %v643_v43  ;;  %v3744_v46 = vld [vmem:[#allocation35_spill] sm:$0xff] }
 0x119   :  { %v769_v29 = vadd.f32 %v705_v54, %v500_v55  ;;  %v469_v40 = vmul.f32 %v2613_v0, %v374_v4  ;;  %v470_v1 = vmul.f32 %v2621_v36, %v374_v4  ;;  %v768_v62 = vadd.f32 %v704_v10, %v499_v19 }
 0x11a   :  { %v1173_v48 = vpack.c.bf16 %v1127_v58, %v3741_v39  ;;  %1420 = vmatprep.mubr.bf16.mxu1 %v1174_v23  ;;  %674 = vperm.xlu1 %1984, %v3742_v63   ;;  %v848_v13 = vpop.permute.xlu1 %847  ;;  %v1100_v21 = vmax.f32 %v1036_v31, 0.0  ;;  %v1099_v2 = vmax.f32 %v1035_v35, 0.0  ;;  %v532_v53 = vadd.f32 %v468_v44, %v3745_v9  ;;  %v3748_v63 = vld [vmem:[#allocation10_spill] sm:$0xff] }
 0x11b   :  { %v533_v11 = vadd.f32 %v469_v40, %v3743_v34  ;;  %v534_v61 = vadd.f32 %v470_v1, %v3744_v46  ;;  %v975_v51 = vmul.f32 %v2632_v22, %v848_v13  ;;  %v976_v49 = vmul.f32 %v2634_v59, %v848_v13  ;;  %v3749_v13 = vld [vmem:[#allocation25_spill] sm:$0xff] }
 0x11c   :  { %1421 = vmatmul.mubr.bf16.vlgmr.msra.gmra.mrb[0].mxu1 %v1173_v48  ;;  %v318_v3 = vpop.permute.xlu0 %317  ;;  %v1160_v42 = vpack.c.bf16 %v1100_v21, %v1098_v28  ;;  %v1159_v6 = vpack.c.bf16 %v1099_v2, %v1097_v24  ;;  %v1038_v50 = vadd.f32 %v2869_v47, %v769_v29  ;;  %v738_v18 = vmul.f32 %v2628_v26, %v643_v43  ;;  %v2136_v24 = vld [vmem:[%s3647_s0 + $0x68] sm:$0xff]  ;;  %v3750_v2 = vld [vmem:[#allocation26_spill] sm:$0xff] }
 0x11d   :  { %1428 = vmatprep.mubr.bf16.mxu1 %v1176_v57  ;;  %v803_v54 = vadd.f32 %v739_v41, %v534_v61  ;;  %v1039_v8 = vadd.f32 %v975_v51, %v770_v14  ;;  %v1040_v58 = vadd.f32 %v976_v49, %v771_v7  ;;  %v800_v16 = vadd.f32 %v736_v15, %v531_v38 }
 0x11e   :  { %v801_v19 = vadd.f32 %v737_v45, %v532_v53  ;;  %1364 = vmatprep.mubr.bf16.mxu0 %v1160_v42  ;;  %v3746_v12 = vmov 3   ;;  %v908_v57 = vpop.permute.xlu1 %907  ;;  %v1129_v44 = vmax.f32 %v2907_v37, 0.0  ;;  %v1037_v60 = vadd.f32 %v2865_v27, %v768_v62  ;;  %v2998_v62 = vld [vmem:[%s3647_s0 + $0xf0] sm:$0xff]  ;;  %v3751_v53 = vld [vmem:[#allocation3_spill] sm:$0xff] }
 0x11f   :  { %1985 = vset.pattern.permute.xlu1 %v3746_v12  ;;  %v802_v28 = vadd.f32 %v738_v18, %v533_v11  ;;  %v1005_v33 = vmul.f32 %v2632_v22, %v908_v57  ;;  %v1006_v47 = vmul.f32 %v2634_v59, %v908_v57  ;;  %1365 = vmatmul.mubr.bf16.gmra.mrb[4].mxu0 %v1159_v6  ;;  %v1104_v14 = vmax.f32 %v1040_v58, 0.0 }
 0x120   :  { %879 = vperm.xlu1 %1985, %v2136_v24   ;;  %v2975_v7 = vpop.permute.xlu0 %321  ;;  %v1102_v43 = vmax.f32 %v1038_v50, 0.0  ;;  %v1072_v38 = vadd.f32 %v2879_v17, %v803_v54  ;;  %v1175_v27 = vpack.c.bf16 %v1131_v20, %v1129_v44  ;;  %v1103_v31 = vmax.f32 %v1039_v8, 0.0  ;;  %v3752_v50 = vld [vmem:[#allocation19_spill] sm:$0xff] }
 0x121   :  { %v1069_v37 = vadd.f32 %v1005_v33, %v800_v16  ;;  %v1070_v55 = vadd.f32 %v1006_v47, %v801_v19  ;;  %v1101_v15 = vmax.f32 %v1037_v60, 0.0  ;;  %v1071_v23 = vadd.f32 %v2873_v52, %v802_v28  ;;  %v3753_v60 = vld [vmem:[#allocation4_spill] sm:$0xff] }
 0x122   :  { %v1162_v35 = vpack.c.bf16 %v1104_v14, %v1102_v43  ;;  %v1136_v56 = vmax.f32 %v1072_v38, 0.0  ;;  %v246_v21 = vmul.f32 %v3749_v13, %v3748_v63  ;;  %v247_v34 = vmul.f32 %v3750_v2, %v3748_v63 }
 0x123   :  { %v314_v10 = vpop.permute.xlu1 %313  ;;  %v1134_v4 = vmax.f32 %v1070_v55, 0.0  ;;  %v1161_v17 = vpack.c.bf16 %v1103_v31, %v1101_v15  ;;  %v1133_v45 = vmax.f32 %v1069_v37, 0.0  ;;  %v1135_v29 = vmax.f32 %v1071_v23, 0.0  ;;  %v3754_v55 = vld [vmem:[#allocation11_spill] sm:$0xff] }
 0x124   :  { %1429 = vmatmul.mubr.bf16.gmra.mrb[4].mxu1 %v1175_v27  ;;  %939 = vperm.xlu1 %1985, %v2343_v30   ;;  %v2982_v39 = vpop.permute.xlu0 %389  ;;  %v2990_v30 = vld [vmem:[%s3647_s0 + $0x70] sm:$0xff]  ;;  %v441_v61 = vmul.f32 %v2613_v0, %v318_v3  ;;  %v442_v51 = vmul.f32 %v2621_v36, %v318_v3  ;;  %v236_v42 = vmul.f32 %v3749_v13, %v3751_v53  ;;  %v3024_v3 = vld [vmem:[%s3647_s0 + $0xf8] sm:$0xff] }
 0x125   :  { %1372 = vmatprep.mubr.bf16.mxu0 %v1162_v35  ;;  %v1178_v48 = vpack.c.bf16 %v1136_v56, %v1134_v4  ;;  %v1177_v40 = vpack.c.bf16 %v1135_v29, %v1133_v45  ;;  %v237_v6 = vmul.f32 %v3750_v2, %v3751_v53  ;;  %v280_v18 = vmul.f32 %v3749_v13, %v3752_v50  ;;  %v3755_v35 = vld [vmem:[#allocation27_spill] sm:$0xff]  ;;  %v3758_v53 = vld [vmem:[#allocation14_spill] sm:$0xff] }
 0x126   :  { %v281_v54 = vmul.f32 %v3750_v2, %v3752_v50  ;;  %v234_v28 = vmul.f32 %v3749_v13, %v3753_v60  ;;  %v235_v33 = vmul.f32 %v3750_v2, %v3753_v60  ;;  %v439_v47 = vmul.f32 %v2613_v0, %v314_v10  ;;  %v3756_v29 = vld [vmem:[#allocation23_spill] sm:$0xff] }
 0x127   :  { %1373 = vmatmul.mubr.bf16.gmra.mrb[8].mxu0 %v1161_v17  ;;  %v2985_v20 = vpop.permute.xlu1 %377  ;;  %1436 = vmatprep.mubr.bf16.mxu1 %v1178_v48  ;;  %v440_v24 = vmul.f32 %v2621_v36, %v314_v10  ;;  %v505_v14 = vadd.f32 %v441_v61, %v236_v42  ;;  %v506_v43 = vadd.f32 %v442_v51, %v237_v6 }
 0x128   :  { %1987 = vset.pattern.permute.xlu1 %v3747_v5  ;;  %v2993_v52 = vpop.permute.xlu0 %333  ;;  %v252_v27 = vmul.f32 %v3749_v13, %v3754_v55  ;;  %v253_v31 = vmul.f32 %v3750_v2, %v3754_v55  ;;  %v979_v15 = vmul.f32 %v2632_v22, %v3755_v35  ;;  %v980_v4 = vmul.f32 %v2634_v59, %v3755_v35  ;;  %v2140_v5 = vld [vmem:[%s3647_s0 + $0x78] sm:$0xff] }
 0x129   :  { %345 = vperm.xlu1 %1987, %v2990_v30   ;;  %v504_v63 = vadd.f32 %v440_v24, %v235_v33  ;;  %v266_v42 = vmul.f32 %v3749_v13, %v3758_v53  ;;  %v267_v6 = vmul.f32 %v3750_v2, %v3758_v53  ;;  %v472_v50 = vmul.f32 %v2621_v36, %v2985_v20 }
 0x12b   :  { %v382_v1 = vpop.permute.xlu1 %381  ;;  %v536_v24 = vadd.f32 %v472_v50, %v267_v6 }
 0x12c   :  { %1437 = vmatmul.mubr.bf16.gmra.mrb[8].mxu1 %v1177_v40  ;;  %v338_v41 = vpop.permute.xlu0 %337  ;;  %v708_v40 = vmul.f32 %v2628_v26, %v3756_v29 }
 0x12d   :  { %409 = vperm.xlu1 %1987, %v2998_v62   ;;  %v451_v11 = vmul.f32 %v2613_v0, %v338_v41  ;;  %v452_v46 = vmul.f32 %v2621_v36, %v338_v41  ;;  %v709_v41 = vmul.f32 %v2630_v32, %v3756_v29 }
 0x12f   :  { %v3009_v49 = vadd.f32 %v451_v11, %v246_v21  ;;  %v3011_v9 = vadd.f32 %v452_v46, %v247_v34  ;;  %v3757_v21 = vld [vmem:[#allocation13_spill] sm:$0xff]  ;;  %v471_v11 = vmul.f32 %v2613_v0, %v2985_v20 }
 0x130   :  { %v587_v8 = vpop.permute.xlu1 %586  ;;  %v406_v58 = vpop.permute.xlu0 %405  ;;  %v268_v34 = vmul.f32 %v3749_v13, %v3757_v21  ;;  %v269_v51 = vmul.f32 %v3750_v2, %v3757_v21 }
 0x131   :  { %413 = vperm.xlu1 %1987, %v3024_v3   ;;  %v710_v16 = vmul.f32 %v2628_v26, %v587_v8  ;;  %v711_v19 = vmul.f32 %v2630_v32, %v587_v8  ;;  %v485_v57 = vmul.f32 %v2613_v0, %v406_v58  ;;  %v486_v44 = vmul.f32 %v2621_v36, %v406_v58 }
 0x133   :  { %v3037_v38 = vadd.f32 %v485_v57, %v280_v18  ;;  %v3039_v37 = vadd.f32 %v486_v44, %v281_v54  ;;  %v774_v23 = vadd.f32 %v710_v16, %v505_v14  ;;  %v775_v17 = vadd.f32 %v711_v19, %v506_v43 }
 0x134   :  { %v647_v10 = vpop.permute.xlu1 %646  ;;  %v350_v56 = vpop.permute.xlu0 %349  ;;  %v473_v18 = vmul.f32 %v2613_v0, %v382_v1  ;;  %v474_v54 = vmul.f32 %v2621_v36, %v382_v1  ;;  %v773_v57 = vadd.f32 %v709_v41, %v504_v63 }
 0x135   :  { %1989 = vset.pattern.permute.xlu1 %v3717_v25  ;;  %v457_v48 = vmul.f32 %v2613_v0, %v350_v56  ;;  %v458_v45 = vmul.f32 %v2621_v36, %v350_v56  ;;  %v503_v25 = vadd.f32 %v439_v47, %v234_v28  ;;  %v1044_v58 = vadd.f32 %v980_v4, %v775_v17  ;;  %v3759_v28 = vld [vmem:[#allocation24_spill] sm:$0xff] }
 0x136   :  { %618 = vperm.xlu1 %1989, %v2140_v5   ;;  %v1043_v16 = vadd.f32 %v979_v15, %v774_v23  ;;  %v742_v33 = vmul.f32 %v2628_v26, %v3759_v28  ;;  %v743_v20 = vmul.f32 %v2630_v32, %v3759_v28  ;;  %v535_v47 = vadd.f32 %v471_v11, %v266_v42 }
 0x137   :  { %v3063_v46 = vadd.f32 %v457_v48, %v252_v27  ;;  %v3065_v61 = vadd.f32 %v458_v45, %v253_v31  ;;  %v772_v19 = vadd.f32 %v708_v40, %v503_v25  ;;  %v740_v1 = vmul.f32 %v2628_v26, %v647_v10 }
 0x138   :  { %v741_v14 = vmul.f32 %v2630_v32, %v647_v10  ;;  %v537_v27 = vadd.f32 %v473_v18, %v268_v34  ;;  %v538_v31 = vadd.f32 %v474_v54, %v269_v51  ;;  %v1108_v15 = vmax.f32 %v1044_v58, 0.0 }
 0x139   :  { %v852_v8 = vpop.permute.xlu1 %851  ;;  %v1107_v4 = vmax.f32 %v1043_v16, 0.0  ;;  %v804_v45 = vadd.f32 %v740_v1, %v535_v47  ;;  %v444_v16 = vmul.f32 %v2621_v36, %v2975_v7  ;;  %v3761_v1 = vld [vmem:[#allocation5_spill] sm:$0xff] }
 0x13a   :  { %678 = vperm.xlu1 %1989, %v2998_v62   ;;  %v977_v44 = vmul.f32 %v2632_v22, %v852_v8  ;;  %v978_v60 = vmul.f32 %v2634_v59, %v852_v8  ;;  %v805_v5 = vadd.f32 %v741_v14, %v536_v24  ;;  %v806_v25 = vadd.f32 %v742_v33, %v537_v27  ;;  %v595_v33 = vpop.permute.xlu0 %594  ;;  %v3762_v14 = vld [vmem:[#allocation15_spill] sm:$0xff] }
 0x13b   :  { %v807_v63 = vadd.f32 %v743_v20, %v538_v31  ;;  %v240_v24 = vmul.f32 %v3749_v13, %v3761_v1 }
 0x13c   :  { %v1041_v43 = vadd.f32 %v977_v44, %v772_v19  ;;  %v1042_v55 = vadd.f32 %v978_v60, %v773_v57  ;;  %v3760_v44 = vld [vmem:[#allocation6_spill] sm:$0xff] }
 0x13d   :  { %v916_v35 = vpop.permute.xlu1 %915  ;;  %v238_v60 = vmul.f32 %v3749_v13, %v3760_v44  ;;  %v239_v28 = vmul.f32 %v3750_v2, %v3760_v44  ;;  %v3765_v44 = vld [vmem:[#allocation33_spill] sm:$0xff] }
 0x13e   :  { %1990 = vset.pattern.permute.xlu1 %v3746_v12  ;;  %v1009_v56 = vmul.f32 %v2632_v22, %v916_v35  ;;  %v1010_v23 = vmul.f32 %v2634_v59, %v916_v35  ;;  %v1106_v17 = vmax.f32 %v1042_v55, 0.0  ;;  %v1105_v48 = vmax.f32 %v1041_v43, 0.0 }
 0x13f   :  { %883 = vperm.xlu1 %1990, %v2990_v30   ;;  %v272_v43 = vmul.f32 %v3749_v13, %v3762_v14  ;;  %v273_v55 = vmul.f32 %v3750_v2, %v3762_v14  ;;  %v508_v31 = vadd.f32 %v444_v16, %v239_v28  ;;  %v477_v35 = vmul.f32 %v2613_v0, %v2982_v39 }
 0x140   :  { %v1164_v10 = vpack.c.bf16 %v1108_v15, %v1106_v17  ;;  %v1163_v29 = vpack.c.bf16 %v1107_v4, %v1105_v48  ;;  %v1073_v40 = vadd.f32 %v1009_v56, %v804_v45  ;;  %v1074_v12 = vadd.f32 %v1010_v23, %v805_v5 }
 0x141   :  { %v920_v41 = vpop.permute.xlu1 %919  ;;  %v478_v15 = vmul.f32 %v2621_v36, %v2982_v39  ;;  %v714_v23 = vmul.f32 %v2628_v26, %v595_v33  ;;  %v715_v17 = vmul.f32 %v2630_v32, %v595_v33  ;;  %v1016_v28 = vmul.f32 %v2634_v59, %v3765_v44 }
 0x142   :  { %v1011_v21 = vmul.f32 %v2632_v22, %v920_v41  ;;  %v1012_v34 = vmul.f32 %v2634_v59, %v920_v41  ;;  %1380 = vmatprep.mubr.bf16.mxu0 %v1164_v10  ;;  %v1138_v53 = vmax.f32 %v1074_v12, 0.0  ;;  %v1137_v6 = vmax.f32 %v1073_v40, 0.0  ;;  %v3763_v40 = vld [vmem:[#allocation16_spill] sm:$0xff]  ;;  %v3764_v12 = vld [vmem:[#allocation30_spill] sm:$0xff] }
 0x143   :  { %947 = vperm.xlu1 %1990, %v2998_v62   ;;  %1381 = vmatmul.mubr.bf16.gmra.mrb[12].mxu0 %v1163_v29  ;;  %v443_v62 = vmul.f32 %v2613_v0, %v2975_v7  ;;  %v241_v7 = vmul.f32 %v3750_v2, %v3761_v1  ;;  %v270_v41 = vmul.f32 %v3749_v13, %v3763_v40 }
 0x144   :  { %v1075_v30 = vadd.f32 %v1011_v21, %v806_v25  ;;  %v1076_v11 = vadd.f32 %v1012_v34, %v807_v63  ;;  %v271_v25 = vmul.f32 %v3750_v2, %v3763_v40  ;;  %v981_v21 = vmul.f32 %v2632_v22, %v3764_v12 }
 0x145   :  { %v507_v27 = vadd.f32 %v443_v62, %v238_v60  ;;  %v982_v34 = vmul.f32 %v2634_v59, %v3764_v12  ;;  %v1015_v60 = vmul.f32 %v2632_v22, %v3765_v44 }
 0x146   :  { %v326_v51 = vpop.permute.xlu1 %325  ;;  %v1140_v42 = vmax.f32 %v1076_v11, 0.0  ;;  %v1139_v50 = vmax.f32 %v1075_v30, 0.0  ;;  %v541_v30 = vadd.f32 %v477_v35, %v272_v43  ;;  %v542_v11 = vadd.f32 %v478_v15, %v273_v55 }
 0x147   :  { %951 = vperm.xlu1 %1990, %v3024_v3   ;;  %v445_v19 = vmul.f32 %v2613_v0, %v326_v51  ;;  %v446_v3 = vmul.f32 %v2621_v36, %v326_v51 }
 0x148   :  { %v1180_v18 = vpack.c.bf16 %v1140_v42, %v1138_v53  ;;  %v1179_v54 = vpack.c.bf16 %v1139_v50, %v1137_v6 }
 0x149   :  { %v509_v4 = vadd.f32 %v445_v19, %v240_v24  ;;  %v510_v56 = vadd.f32 %v446_v3, %v241_v7 }
 0x14a   :  { %v386_v8 = vpop.permute.xlu1 %385  ;;  %1444 = vmatprep.mubr.bf16.mxu1 %v1180_v18 }
 0x14b   :  { %1445 = vmatmul.mubr.bf16.gmra.mrb[12].mxu1 %v1179_v54  ;;  %v475_v39 = vmul.f32 %v2613_v0, %v386_v8  ;;  %v476_v63 = vmul.f32 %v2621_v36, %v386_v8  ;;  %v778_v51 = vadd.f32 %v714_v23, %v509_v4  ;;  %v779_v53 = vadd.f32 %v715_v17, %v510_v56 }
 0x14d   :  { %v539_v8 = vadd.f32 %v475_v39, %v270_v41  ;;  %v540_v16 = vadd.f32 %v476_v63, %v271_v25  ;;  %v449_v39 = vmul.f32 %v2613_v0, %v2993_v52  ;;  %v450_v63 = vmul.f32 %v2621_v36, %v2993_v52 }
 0x14f   :  { %v591_v58 = vpop.permute.xlu1 %590 }
 0x150   :  { %v712_v20 = vmul.f32 %v2628_v26, %v591_v58  ;;  %v713_v47 = vmul.f32 %v2630_v32, %v591_v58 }
 0x152   :  { %v776_v45 = vadd.f32 %v712_v20, %v507_v27  ;;  %v777_v5 = vadd.f32 %v713_v47, %v508_v31 }
 0x153   :  { %v655_v57 = vpop.permute.xlu1 %654 }
 0x154   :  { %v744_v42 = vmul.f32 %v2628_v26, %v655_v57  ;;  %v745_v6 = vmul.f32 %v2630_v32, %v655_v57  ;;  %v1046_v58 = vadd.f32 %v982_v34, %v777_v5  ;;  %v1045_v62 = vadd.f32 %v981_v21, %v776_v45  ;;  %v3766_v21 = vld [vmem:[#allocation7_spill] sm:$0xff] }
 0x155   :  { %v244_v34 = vmul.f32 %v3749_v13, %v3766_v21 }
 0x156   :  { %v808_v33 = vadd.f32 %v744_v42, %v539_v8  ;;  %v809_v20 = vadd.f32 %v745_v6, %v540_v16  ;;  %v1110_v24 = vmax.f32 %v1046_v58, 0.0  ;;  %v1109_v7 = vmax.f32 %v1045_v62, 0.0 }
 0x157   :  { %v659_v48 = vpop.permute.xlu1 %658  ;;  %v513_v6 = vadd.f32 %v449_v39, %v244_v34 }
 0x158   :  { %v746_v10 = vmul.f32 %v2628_v26, %v659_v48  ;;  %v747_v29 = vmul.f32 %v2630_v32, %v659_v48 }
 0x15a   :  { %v810_v50 = vadd.f32 %v746_v10, %v541_v30  ;;  %v811_v18 = vadd.f32 %v747_v29, %v542_v11  ;;  %v245_v30 = vmul.f32 %v3750_v2, %v3766_v21 }
 0x15c   :  { %v864_v54 = vpop.permute.xlu1 %863  ;;  %v1080_v14 = vadd.f32 %v1016_v28, %v811_v18  ;;  %v1079_v43 = vadd.f32 %v1015_v60, %v810_v50  ;;  %v514_v50 = vadd.f32 %v450_v63, %v245_v30  ;;  %v599_v18 = vpop.permute.xlu0 %598  ;;  %v3768_v28 = vld [vmem:[#allocation38_spill] sm:$0xff] }
 0x15d   :  { %v983_v19 = vmul.f32 %v2632_v22, %v864_v54  ;;  %v984_v3 = vmul.f32 %v2634_v59, %v864_v54  ;;  %v3767_v54 = vld [vmem:[#allocation8_spill] sm:$0xff]  ;;  %v716_v44 = vmul.f32 %v2628_v26, %v599_v18  ;;  %v717_v60 = vmul.f32 %v2630_v32, %v599_v18 }
 0x15e   :  { %v1144_v45 = vmax.f32 %v1080_v14, 0.0  ;;  %v1143_v10 = vmax.f32 %v1079_v43, 0.0  ;;  %v242_v52 = vmul.f32 %v3749_v13, %v3767_v54  ;;  %v243_v58 = vmul.f32 %v3750_v2, %v3767_v54  ;;  %v3770_v14 = vld [vmem:[#allocation18_spill] sm:$0xff] }
 0x15f   :  { %v1047_v57 = vadd.f32 %v983_v19, %v778_v51  ;;  %v1048_v47 = vadd.f32 %v984_v3, %v779_v53  ;;  %v274_v43 = vmul.f32 %v3749_v13, %v3770_v14 }
 0x160   :  { %v924_v1 = vpop.permute.xlu1 %923 }
 0x161   :  { %v1013_v55 = vmul.f32 %v2632_v22, %v924_v1  ;;  %v1014_v27 = vmul.f32 %v2634_v59, %v924_v1  ;;  %v1112_v31 = vmax.f32 %v1048_v47, 0.0  ;;  %v1111_v35 = vmax.f32 %v1047_v57, 0.0  ;;  %v3769_v1 = vld [vmem:[#allocation17_spill] sm:$0xff] }
 0x163   :  { %v1077_v15 = vadd.f32 %v1013_v55, %v808_v33  ;;  %v1078_v4 = vadd.f32 %v1014_v27, %v809_v20  ;;  %v1166_v56 = vpack.c.bf16 %v1112_v31, %v1110_v24  ;;  %v1165_v23 = vpack.c.bf16 %v1111_v35, %v1109_v7  ;;  %v667_v27 = vpop.permute.xlu0 %666 }
 0x164   :  { %v987_v33 = vmul.f32 %v2632_v22, %v3768_v28  ;;  %v988_v20 = vmul.f32 %v2634_v59, %v3768_v28  ;;  %v276_v24 = vmul.f32 %v3749_v13, %v3769_v1  ;;  %v277_v7 = vmul.f32 %v3750_v2, %v3769_v1 }
 0x165   :  { %v330_v17 = vpop.permute.xlu1 %329  ;;  %1388 = vmatprep.mubr.bf16.mxu0 %v1166_v56  ;;  %v1142_v48 = vmax.f32 %v1078_v4, 0.0  ;;  %v1141_v5 = vmax.f32 %v1077_v15, 0.0  ;;  %v275_v55 = vmul.f32 %v3750_v2, %v3770_v14 }
 0x166   :  { %1389 = vmatmul.mubr.bf16.gmra.mrb[16].mxu0 %v1165_v23  ;;  %v447_v53 = vmul.f32 %v2613_v0, %v330_v17  ;;  %v448_v42 = vmul.f32 %v2621_v36, %v330_v17 }
 0x167   :  { %v1182_v29 = vpack.c.bf16 %v1144_v45, %v1142_v48  ;;  %v1181_v40 = vpack.c.bf16 %v1143_v10, %v1141_v5 }
 0x168   :  { %v511_v19 = vadd.f32 %v447_v53, %v242_v52  ;;  %v512_v3 = vadd.f32 %v448_v42, %v243_v58 }
 0x169   :  { %v394_v41 = vpop.permute.xlu1 %393  ;;  %1452 = vmatprep.mubr.bf16.mxu1 %v1182_v29  ;;  %v750_v29 = vmul.f32 %v2628_v26, %v667_v27 }
 0x16a   :  { %1453 = vmatmul.mubr.bf16.gmra.mrb[16].mxu1 %v1181_v40  ;;  %v479_v57 = vmul.f32 %v2613_v0, %v394_v41  ;;  %v480_v47 = vmul.f32 %v2621_v36, %v394_v41  ;;  %v780_v23 = vadd.f32 %v716_v44, %v511_v19  ;;  %v781_v17 = vadd.f32 %v717_v60, %v512_v3 }
 0x16b   :  { %v751_v40 = vmul.f32 %v2630_v32, %v667_v27 }
 0x16c   :  { %v543_v5 = vadd.f32 %v479_v57, %v274_v43  ;;  %v544_v10 = vadd.f32 %v480_v47, %v275_v55 }
 0x16d   :  { %v398_v25 = vpop.permute.xlu1 %397 }
 0x16e   :  { %v481_v31 = vmul.f32 %v2613_v0, %v398_v25  ;;  %v482_v35 = vmul.f32 %v2621_v36, %v398_v25 }
 0x170   :  { %v546_v21 = vadd.f32 %v482_v35, %v277_v7  ;;  %v611_v35 = vpop.permute.xlu0 %610 }
 0x172   :  { %v603_v12 = vpop.permute.xlu1 %602 }
 0x173   :  { %v718_v11 = vmul.f32 %v2628_v26, %v603_v12  ;;  %v719_v51 = vmul.f32 %v2630_v32, %v603_v12  ;;  %v545_v12 = vadd.f32 %v481_v31, %v276_v24 }
 0x175   :  { %v782_v8 = vadd.f32 %v718_v11, %v513_v6  ;;  %v783_v16 = vadd.f32 %v719_v51, %v514_v50  ;;  %v814_v58 = vadd.f32 %v750_v29, %v545_v12 }
 0x176   :  { %v663_v62 = vpop.permute.xlu1 %662 }
 0x177   :  { %v1052_v4 = vadd.f32 %v988_v20, %v783_v16  ;;  %v1051_v56 = vadd.f32 %v987_v33, %v782_v8  ;;  %v748_v41 = vmul.f32 %v2628_v26, %v663_v62  ;;  %v749_v39 = vmul.f32 %v2630_v32, %v663_v62 }
 0x178   :  { %v815_v8 = vadd.f32 %v751_v40, %v546_v21  ;;  %v3772_v21 = vld [vmem:[#allocation20_spill] sm:$0xff] }
 0x179   :  { %v1116_v30 = vmax.f32 %v1052_v4, 0.0  ;;  %v1115_v11 = vmax.f32 %v1051_v56, 0.0  ;;  %v812_v50 = vadd.f32 %v748_v41, %v543_v5  ;;  %v813_v18 = vadd.f32 %v749_v39, %v544_v10  ;;  %v3771_v56 = vld [vmem:[#allocation9_spill] sm:$0xff] }
 0x17a   :  { %v722_v5 = vmul.f32 %v2628_v26, %v611_v35  ;;  %v723_v10 = vmul.f32 %v2630_v32, %v611_v35 }
 0x17b   :  { %v868_v15 = vpop.permute.xlu1 %867 }
 0x17c   :  { %v985_v48 = vmul.f32 %v2632_v22, %v868_v15  ;;  %v986_v45 = vmul.f32 %v2634_v59, %v868_v15 }
 0x17e   :  { %v1049_v25 = vadd.f32 %v985_v48, %v780_v23  ;;  %v1050_v63 = vadd.f32 %v986_v45, %v781_v17  ;;  %v248_v23 = vmul.f32 %v3749_v13, %v3771_v56  ;;  %v249_v17 = vmul.f32 %v3750_v2, %v3771_v56 }
 0x17f   :  { %v932_v34 = vpop.permute.xlu1 %931 }
 0x180   :  { %v1113_v51 = vmax.f32 %v1049_v25, 0.0  ;;  %v1114_v53 = vmax.f32 %v1050_v63, 0.0  ;;  %v1017_v42 = vmul.f32 %v2632_v22, %v932_v34  ;;  %v1018_v6 = vmul.f32 %v2634_v59, %v932_v34 }
 0x181   :  { %v278_v34 = vmul.f32 %v3749_v13, %v3772_v21 }
 0x182   :  { %v1168_v54 = vpack.c.bf16 %v1116_v30, %v1114_v53  ;;  %v1167_v52 = vpack.c.bf16 %v1115_v11, %v1113_v51  ;;  %v1081_v16 = vadd.f32 %v1017_v42, %v812_v50  ;;  %v1082_v19 = vadd.f32 %v1018_v6, %v813_v18  ;;  %v3773_v11 = vld [vmem:[#allocation39_spill] sm:$0xff] }
 0x183   :  { %v936_v62 = vpop.permute.xlu1 %935  ;;  %v279_v30 = vmul.f32 %v3750_v2, %v3772_v21  ;;  %v989_v51 = vmul.f32 %v2632_v22, %v3773_v11 }
 0x184   :  { %v1019_v3 = vmul.f32 %v2632_v22, %v936_v62  ;;  %v1020_v44 = vmul.f32 %v2634_v59, %v936_v62  ;;  %1396 = vmatprep.mubr.bf16.mxu0 %v1168_v54  ;;  %v1145_v33 = vmax.f32 %v1081_v16, 0.0  ;;  %v1146_v20 = vmax.f32 %v1082_v19, 0.0 }
 0x185   :  { %1397 = vmatmul.mubr.bf16.gmra.mrb[20].mxu0 %v1167_v52 }
 0x186   :  { %v1083_v60 = vadd.f32 %v1019_v3, %v814_v58  ;;  %v1084_v28 = vadd.f32 %v1020_v44, %v815_v8  ;;  %v3774_v3 = vld [vmem:[#allocation40_spill] sm:$0xff] }
 0x187   :  { %v1023_v44 = vmul.f32 %v2632_v22, %v3774_v3 }
 0x188   :  { %v1147_v57 = vmax.f32 %v1083_v60, 0.0  ;;  %v1148_v47 = vmax.f32 %v1084_v28, 0.0  ;;  %v342_v1 = vpop.permute.xlu1 %341  ;;  %v1024_v60 = vmul.f32 %v2634_v59, %v3774_v3 }
 0x189   :  { %v453_v55 = vmul.f32 %v2613_v0, %v342_v1  ;;  %v454_v27 = vmul.f32 %v2621_v36, %v342_v1 }
 0x18a   :  { %v1184_v24 = vpack.c.bf16 %v1148_v47, %v1146_v20  ;;  %v1183_v7 = vpack.c.bf16 %v1147_v57, %v1145_v33 }
 0x18b   :  { %v517_v48 = vadd.f32 %v453_v55, %v248_v23  ;;  %v518_v45 = vadd.f32 %v454_v27, %v249_v17 }
 0x18c   :  { %v402_v14 = vpop.permute.xlu1 %401  ;;  %1460 = vmatprep.mubr.bf16.mxu1 %v1184_v24 }
 0x18d   :  { %1461 = vmatmul.mubr.bf16.gmra.mrb[20].mxu1 %v1183_v7  ;;  %v483_v63 = vmul.f32 %v2613_v0, %v402_v14  ;;  %v484_v12 = vmul.f32 %v2621_v36, %v402_v14  ;;  %v787_v53 = vadd.f32 %v723_v10, %v518_v45 }
 0x18f   :  { %v547_v8 = vadd.f32 %v483_v63, %v278_v34  ;;  %v548_v62 = vadd.f32 %v484_v12, %v279_v30  ;;  %v3775_v30 = vld [vmem:[#allocation12_spill] sm:$0xff] }
 0x191   :  { %v607_v43 = vpop.permute.xlu1 %606 }
 0x192   :  { %v720_v15 = vmul.f32 %v2628_v26, %v607_v43  ;;  %v721_v4 = vmul.f32 %v2630_v32, %v607_v43 }
 0x194   :  { %v784_v40 = vadd.f32 %v720_v15, %v3009_v49  ;;  %v785_v41 = vadd.f32 %v721_v4, %v3011_v9  ;;  %v990_v49 = vmul.f32 %v2634_v59, %v3773_v11  ;;  %v786_v9 = vadd.f32 %v722_v5, %v517_v48 }
 0x195   :  { %v671_v31 = vpop.permute.xlu1 %670  ;;  %v250_v11 = vmul.f32 %v3749_v13, %v3775_v30 }
 0x196   :  { %v752_v42 = vmul.f32 %v2628_v26, %v671_v31  ;;  %v753_v6 = vmul.f32 %v2630_v32, %v671_v31  ;;  %v1053_v50 = vadd.f32 %v989_v51, %v784_v40  ;;  %v1054_v18 = vadd.f32 %v990_v49, %v785_v41 }
 0x197   :  { %v251_v51 = vmul.f32 %v3750_v2, %v3775_v30 }
 0x198   :  { %v816_v28 = vadd.f32 %v752_v42, %v547_v8  ;;  %v817_v33 = vadd.f32 %v753_v6, %v548_v62  ;;  %v1118_v1 = vmax.f32 %v1054_v18, 0.0  ;;  %v1117_v24 = vmax.f32 %v1053_v50, 0.0 }
 0x199   :  { %v675_v29 = vpop.permute.xlu1 %674 }
 0x19a   :  { %v754_v39 = vmul.f32 %v2628_v26, %v675_v29  ;;  %v755_v25 = vmul.f32 %v2630_v32, %v675_v29  ;;  %v615_v29 = vpop.permute.xlu0 %614 }
 0x19c   :  { %v818_v54 = vadd.f32 %v754_v39, %v3037_v38  ;;  %v819_v52 = vadd.f32 %v755_v25, %v3039_v37 }
 0x19e   :  { %v1087_v38 = vadd.f32 %v1023_v44, %v818_v54  ;;  %v1088_v47 = vadd.f32 %v1024_v60, %v819_v52  ;;  %v683_v41 = vpop.permute.xlu0 %682 }
 0x19f   :  { %v880_v58 = vpop.permute.xlu1 %879 }
 0x1a0   :  { %v991_v16 = vmul.f32 %v2632_v22, %v880_v58  ;;  %v992_v19 = vmul.f32 %v2634_v59, %v880_v58  ;;  %v1152_v17 = vmax.f32 %v1088_v47, 0.0  ;;  %v1151_v48 = vmax.f32 %v1087_v38, 0.0  ;;  %v3776_v58 = vld [vmem:[#allocation22_spill] sm:$0xff]  ;;  %v3777_v38 = vld [vmem:[#allocation21_spill] sm:$0xff] }
 0x1a1   :  { %v282_v8 = vmul.f32 %v3749_v13, %v3776_v58  ;;  %v283_v62 = vmul.f32 %v3750_v2, %v3776_v58  ;;  %v284_v47 = vmul.f32 %v3749_v13, %v3777_v38 }
 0x1a2   :  { %v1055_v20 = vadd.f32 %v991_v16, %v786_v9  ;;  %v1056_v57 = vadd.f32 %v992_v19, %v787_v53  ;;  %v888_v34 = vpop.permute.xlu0 %887 }
 0x1a3   :  { %v940_v37 = vpop.permute.xlu1 %939  ;;  %v995_v42 = vmul.f32 %v2632_v22, %v888_v34  ;;  %v996_v6 = vmul.f32 %v2634_v59, %v888_v34 }
 0x1a4   :  { %v1119_v7 = vmax.f32 %v1055_v20, 0.0  ;;  %v1120_v14 = vmax.f32 %v1056_v57, 0.0  ;;  %v1021_v43 = vmul.f32 %v2632_v22, %v940_v37  ;;  %v1022_v55 = vmul.f32 %v2634_v59, %v940_v37 }
 0x1a5   :  { %v285_v37 = vmul.f32 %v3750_v2, %v3777_v38  ;;  %v758_v2 = vmul.f32 %v2628_v26, %v683_v41 }
 0x1a6   :  { %v1085_v27 = vadd.f32 %v1021_v43, %v816_v28  ;;  %v1086_v31 = vadd.f32 %v1022_v55, %v817_v33  ;;  %v1170_v35 = vpack.c.bf16 %v1120_v14, %v1118_v1  ;;  %v1169_v15 = vpack.c.bf16 %v1119_v7, %v1117_v24 }
 0x1a8   :  { %v1149_v4 = vmax.f32 %v1085_v27, 0.0  ;;  %v1150_v56 = vmax.f32 %v1086_v31, 0.0  ;;  %v346_v23 = vpop.permute.xlu1 %345  ;;  %1404 = vmatprep.mubr.bf16.mxu0 %v1170_v35 }
 0x1a9   :  { %1405 = vmatmul.mubr.bf16.gmra.mrb[24].mxu0 %v1169_v15  ;;  %v455_v12 = vmul.f32 %v2613_v0, %v346_v23  ;;  %v456_v21 = vmul.f32 %v2621_v36, %v346_v23  ;;  %v759_v23 = vmul.f32 %v2630_v32, %v683_v41 }
 0x1aa   :  { %v1186_v45 = vpack.c.bf16 %v1152_v17, %v1150_v56  ;;  %v1185_v5 = vpack.c.bf16 %v1151_v48, %v1149_v4 }
 0x1ab   :  { %v519_v50 = vadd.f32 %v455_v12, %v250_v11  ;;  %v520_v18 = vadd.f32 %v456_v21, %v251_v51 }
 0x1ac   :  { %v410_v10 = vpop.permute.xlu1 %409  ;;  %1468 = vmatprep.mubr.bf16.mxu1 %v1186_v45 }
 0x1ad   :  { %1469 = vmatmul.mubr.bf16.gmra.mrb[24].mxu1 %v1185_v5  ;;  %v487_v54 = vmul.f32 %v2613_v0, %v410_v10  ;;  %v488_v52 = vmul.f32 %v2621_v36, %v410_v10 }
 0x1af   :  { %v551_v1 = vadd.f32 %v487_v54, %v282_v8  ;;  %v552_v24 = vadd.f32 %v488_v52, %v283_v62 }
 0x1b0   :  { %v414_v40 = vpop.permute.xlu1 %413 }
 0x1b1   :  { %v489_v16 = vmul.f32 %v2613_v0, %v414_v40  ;;  %v490_v19 = vmul.f32 %v2621_v36, %v414_v40 }
 0x1b3   :  { %v553_v43 = vadd.f32 %v489_v16, %v284_v47  ;;  %v554_v55 = vadd.f32 %v490_v19, %v285_v37 }
 0x1b5   :  { %v619_v39 = vpop.permute.xlu1 %618  ;;  %v823_v40 = vadd.f32 %v759_v23, %v554_v55 }
 0x1b6   :  { %v726_v25 = vmul.f32 %v2628_v26, %v619_v39  ;;  %v727_v63 = vmul.f32 %v2630_v32, %v619_v39 }
 0x1b8   :  { %v790_v9 = vadd.f32 %v726_v25, %v3063_v46  ;;  %v791_v53 = vadd.f32 %v727_v63, %v3065_v61  ;;  %v724_v46 = vmul.f32 %v2628_v26, %v615_v29  ;;  %v725_v61 = vmul.f32 %v2630_v32, %v615_v29 }
 0x1b9   :  { %v679_v49 = vpop.permute.xlu1 %678  ;;  %v822_v29 = vadd.f32 %v758_v2, %v553_v43 }
 0x1ba   :  { %v1059_v3 = vadd.f32 %v995_v42, %v790_v9  ;;  %v1060_v44 = vadd.f32 %v996_v6, %v791_v53  ;;  %v788_v28 = vadd.f32 %v724_v46, %v519_v50  ;;  %v789_v33 = vadd.f32 %v725_v61, %v520_v18  ;;  %v3261_v9 = vld [vmem:[%s3650_s3] ss:$0 sm:$0xff] }
 0x1bb   :  { %v756_v0 = vmul.f32 %v2628_v26, %v679_v49  ;;  %v757_v36 = vmul.f32 %v2630_v32, %v679_v49 }
 0x1bc   :  { %v1123_v27 = vmax.f32 %v1059_v3, 0.0  ;;  %v1124_v31 = vmax.f32 %v1060_v44, 0.0 }
 0x1bd   :  { %v820_v17 = vadd.f32 %v756_v0, %v551_v1  ;;  %v821_v48 = vadd.f32 %v757_v36, %v552_v24 }
 0x1be   :  { %v884_v60 = vpop.permute.xlu1 %883 }
 0x1bf   :  { %v993_v20 = vmul.f32 %v2632_v22, %v884_v60  ;;  %v994_v57 = vmul.f32 %v2634_v59, %v884_v60 }
 0x1c1   :  { %v1057_v7 = vadd.f32 %v993_v20, %v788_v28  ;;  %v1058_v14 = vadd.f32 %v994_v57, %v789_v33 }
 0x1c2   :  { %v948_v35 = vpop.permute.xlu1 %947 }
 0x1c3   :  { %v1121_v15 = vmax.f32 %v1057_v7, 0.0  ;;  %v1122_v4 = vmax.f32 %v1058_v14, 0.0  ;;  %v1025_v13 = vmul.f32 %v2632_v22, %v948_v35  ;;  %v1026_v56 = vmul.f32 %v2634_v59, %v948_v35 }
 0x1c5   :  { %v1172_v45 = vpack.c.bf16 %v1124_v31, %v1122_v4  ;;  %v1171_v5 = vpack.c.bf16 %v1123_v27, %v1121_v15  ;;  %v1089_v39 = vadd.f32 %v1025_v13, %v820_v17  ;;  %v1090_v25 = vadd.f32 %v1026_v56, %v821_v48 }
 0x1c6   :  { %v952_v10 = vpop.permute.xlu1 %951 }
 0x1c7   :  { %v1027_v63 = vmul.f32 %v2632_v22, %v952_v10  ;;  %v1028_v12 = vmul.f32 %v2634_v59, %v952_v10  ;;  %1412 = vmatprep.mubr.bf16.mxu0 %v1172_v45  ;;  %v1153_v26 = vmax.f32 %v1089_v39, 0.0  ;;  %v1154_v30 = vmax.f32 %v1090_v25, 0.0 }
 0x1c8   :  { %1413 = vmatmul.mubr.bf16.gmra.mrb[28].mxu0 %v1171_v5 }
 0x1c9   :  { %v1091_v21 = vadd.f32 %v1027_v63, %v822_v29  ;;  %v1092_v34 = vadd.f32 %v1028_v12, %v823_v40 }
 0x1cb   :  { %v1155_v32 = vmax.f32 %v1091_v21, 0.0  ;;  %v1156_v41 = vmax.f32 %v1092_v34, 0.0 }
 0x1cd   :  { %v1188_v11 = vpack.c.bf16 %v1156_v41, %v1154_v30  ;;  %v1187_v51 = vpack.c.bf16 %v1155_v32, %v1153_v26 }
 0x1cf   :  { %1476 = vmatprep.mubr.bf16.mxu1 %v1188_v11 }
 0x1d0   :  { %1477 = vmatmul.mubr.bf16.gmra.mrb[28].mxu1 %v1187_v51 }
 0x1e9   :  { %v1845_v49 = vpop.f32.mrb[0].mxu0 }
 0x1ea   :  { %v1846_v22 = vpop.f32.mrb[1].mxu0 }
 0x1eb   :  { %v1847_v59 = vadd.f32 %v1846_v22, %v1845_v49  ;;  %v1848_v53 = vpop.f32.mrb[2].mxu0 }
 0x1ec   :  { %v1849_v42 = vpop.f32.mrb[3].mxu0 }
 0x1ed   :  { %v3264_v6 = vadd.f32 %v1847_v59, %v3261_v9  ;;  %v1850_v50 = vadd.f32 %v1849_v42, %v1848_v53 }
 0x1ef   :  { %v1893_v18 = vpop.f32.mrb[0].mxu1  ;;  %1485 = vmax.xlane.f32.xlu0 %v3264_v6  ;;  %v3275_v28 = vadd.f32 %v1850_v50, %v3261_v9 }
 0x1f0   :  { %v1894_v54 = vpop.f32.mrb[1].mxu1 }
 0x1f1   :  { %v1895_v52 = vadd.f32 %v1894_v54, %v1893_v18  ;;  %v1896_v58 = vpop.f32.mrb[2].mxu1 }
 0x1f2   :  { %v1897_v8 = vpop.f32.mrb[3].mxu1  ;;  %v1851_v61 = vpop.f32.mrb[4].mxu0 }
 0x1f3   :  { %v3268_v62 = vadd.f32 %v1895_v52, %v3261_v9  ;;  %v1898_v46 = vadd.f32 %v1897_v8, %v1896_v58  ;;  %v1852_v16 = vpop.f32.mrb[5].mxu0 }
 0x1f4   :  { %v1853_v3 = vadd.f32 %v1852_v16, %v1851_v61  ;;  %v1854_v44 = vpop.f32.mrb[6].mxu0 }
 0x1f5   :  { %v3271_v19 = vadd.f32 %v1898_v46, %v3261_v9  ;;  %1517 = vmax.xlane.f32.xlu1 %v3268_v62  ;;  %v1855_v60 = vpop.f32.mrb[7].mxu0 }
 0x1f6   :  { %v1856_v33 = vadd.f32 %v1855_v60, %v1854_v44  ;;  %v3279_v38 = vadd.f32 %v1853_v3, %v3261_v9 }
 0x1f7   :  { %v1899_v20 = vpop.f32.mrb[4].mxu1  ;;  %1519 = vmax.xlane.f32.xlu0 %v3271_v19 }
 0x1f8   :  { %v1900_v57 = vpop.f32.mrb[5].mxu1  ;;  %v3287_v14 = vadd.f32 %v1856_v33, %v3261_v9 }
 0x1f9   :  { %v1901_v47 = vadd.f32 %v1900_v57, %v1899_v20  ;;  %v1902_v37 = vpop.f32.mrb[6].mxu1  ;;  %1487 = vmax.xlane.f32.xlu1 %v3275_v28 }
 0x1fa   :  { %v1903_v1 = vpop.f32.mrb[7].mxu1  ;;  %v1857_v36 = vpop.f32.mrb[8].mxu0 }
 0x1fb   :  { %v3283_v24 = vadd.f32 %v1901_v47, %v3261_v9  ;;  %v1904_v0 = vadd.f32 %v1903_v1, %v1902_v37  ;;  %1489 = vmax.xlane.f32.xlu0 %v3279_v38  ;;  %v1858_v7 = vpop.f32.mrb[9].mxu0 }
 0x1fc   :  { %v1859_v43 = vadd.f32 %v1858_v7, %v1857_v36  ;;  %v1860_v55 = vpop.f32.mrb[10].mxu0 }
 0x1fd   :  { %1521 = vmax.xlane.f32.xlu1 %v3283_v24  ;;  %v1861_v27 = vpop.f32.mrb[11].mxu0  ;;  %v3295_v13 = vadd.f32 %v1904_v0, %v3261_v9 }
 0x1fe   :  { %v3291_v31 = vadd.f32 %v1859_v43, %v3261_v9  ;;  %v1862_v35 = vadd.f32 %v1861_v27, %v1860_v55 }
 0x1ff   :  { %1491 = vmax.xlane.f32.xlu0 %v3287_v14  ;;  %v1905_v15 = vpop.f32.mrb[8].mxu1 }
 0x200   :  { %v1906_v4 = vpop.f32.mrb[9].mxu1  ;;  %v3303_v45 = vadd.f32 %v1862_v35, %v3261_v9 }
 0x201   :  { %v1907_v56 = vadd.f32 %v1906_v4, %v1905_v15  ;;  %1493 = vmax.xlane.f32.xlu1 %v3291_v31  ;;  %v1908_v2 = vpop.f32.mrb[10].mxu1 }
 0x202   :  { %v1909_v23 = vpop.f32.mrb[11].mxu1 }
 0x203   :  { %v3299_v17 = vadd.f32 %v1907_v56, %v3261_v9  ;;  %v1910_v48 = vadd.f32 %v1909_v23, %v1908_v2  ;;  %1523 = vmax.xlane.f32.xlu0 %v3295_v13 }
 0x205   :  { %1525 = vmax.xlane.f32.xlu1 %v3299_v17  ;;  %v3308_v5 = vadd.f32 %v1910_v48, %v3261_v9 }
 0x207   :  { %1495 = vmax.xlane.f32.xlu0 %v3303_v45 }
 0x20b   :  { %1527 = vmax.xlane.f32.xlu0 %v3308_v5 }
 0x216   :  { %v1863_v10 = vpop.f32.mrb[12].mxu0 }
 0x217   :  { %v1864_v29 = vpop.f32.mrb[13].mxu0 }
 0x218   :  { %v1865_v40 = vadd.f32 %v1864_v29, %v1863_v10  ;;  %v1866_v39 = vpop.f32.mrb[14].mxu0 }
 0x219   :  { %v1867_v25 = vpop.f32.mrb[15].mxu0 }
 0x21a   :  { %v3312_v63 = vadd.f32 %v1865_v40, %v3261_v9  ;;  %v1868_v12 = vadd.f32 %v1867_v25, %v1866_v39 }
 0x21c   :  { %v3315_v21 = vadd.f32 %v1868_v12, %v3261_v9  ;;  %1497 = vmax.xlane.f32.xlu1 %v3312_v63 }
 0x21e   :  { %v1911_v34 = vpop.f32.mrb[12].mxu1  ;;  %1499 = vmax.xlane.f32.xlu0 %v3315_v21 }
 0x21f   :  { %v1912_v26 = vpop.f32.mrb[13].mxu1 }
 0x220   :  { %v1913_v30 = vadd.f32 %v1912_v26, %v1911_v34  ;;  %v1914_v32 = vpop.f32.mrb[14].mxu1 }
 0x221   :  { %v1915_v41 = vpop.f32.mrb[15].mxu1 }
 0x222   :  { %v3320_v11 = vadd.f32 %v1913_v30, %v3261_v9  ;;  %v1916_v51 = vadd.f32 %v1915_v41, %v1914_v32 }
 0x224   :  { %v3323_v49 = vadd.f32 %v1916_v51, %v3261_v9  ;;  %1529 = vmax.xlane.f32.xlu1 %v3320_v11 }
 0x226   :  { %1531 = vmax.xlane.f32.xlu0 %v3323_v49 }
 0x239   :  { %v1869_v22 = vpop.f32.mrb[16].mxu0 }
 0x23a   :  { %v1870_v59 = vpop.f32.mrb[17].mxu0 }
 0x23b   :  { %v1871_v53 = vadd.f32 %v1870_v59, %v1869_v22  ;;  %v1872_v42 = vpop.f32.mrb[18].mxu0 }
 0x23c   :  { %v1873_v50 = vpop.f32.mrb[19].mxu0 }
 0x23d   :  { %v3328_v18 = vadd.f32 %v1871_v53, %v3261_v9  ;;  %v1874_v54 = vadd.f32 %v1873_v50, %v1872_v42  ;;  %v1917_v52 = vpop.f32.mrb[16].mxu1 }
 0x23e   :  { %v1918_v58 = vpop.f32.mrb[17].mxu1 }
 0x23f   :  { %v3331_v8 = vadd.f32 %v1874_v54, %v3261_v9  ;;  %v1919_v46 = vadd.f32 %v1918_v58, %v1917_v52  ;;  %v1920_v61 = vpop.f32.mrb[18].mxu1  ;;  %1501 = vmax.xlane.f32.xlu1 %v3328_v18 }
 0x240   :  { %v1921_v16 = vpop.f32.mrb[19].mxu1 }
 0x241   :  { %v3335_v3 = vadd.f32 %v1919_v46, %v3261_v9  ;;  %v1922_v44 = vadd.f32 %v1921_v16, %v1920_v61  ;;  %1503 = vmax.xlane.f32.xlu0 %v3331_v8 }
 0x243   :  { %v3339_v60 = vadd.f32 %v1922_v44, %v3261_v9  ;;  %1533 = vmax.xlane.f32.xlu1 %v3335_v3 }
 0x245   :  { %1535 = vmax.xlane.f32.xlu0 %v3339_v60 }
 0x258   :  { %v1875_v33 = vpop.f32.mrb[20].mxu0 }
 0x259   :  { %v1876_v20 = vpop.f32.mrb[21].mxu0 }
 0x25a   :  { %v1877_v57 = vadd.f32 %v1876_v20, %v1875_v33  ;;  %v1878_v47 = vpop.f32.mrb[22].mxu0 }
 0x25b   :  { %v1879_v37 = vpop.f32.mrb[23].mxu0 }
 0x25c   :  { %v3344_v1 = vadd.f32 %v1877_v57, %v3261_v9  ;;  %v1880_v0 = vadd.f32 %v1879_v37, %v1878_v47 }
 0x25e   :  { %v3347_v36 = vadd.f32 %v1880_v0, %v3261_v9  ;;  %1505 = vmax.xlane.f32.xlu1 %v3344_v1 }
 0x260   :  { %1507 = vmax.xlane.f32.xlu0 %v3347_v36  ;;  %v1923_v7 = vpop.f32.mrb[20].mxu1 }
 0x261   :  { %v1924_v43 = vpop.f32.mrb[21].mxu1 }
 0x262   :  { %v1925_v55 = vadd.f32 %v1924_v43, %v1923_v7  ;;  %v1926_v27 = vpop.f32.mrb[22].mxu1 }
 0x263   :  { %v1927_v35 = vpop.f32.mrb[23].mxu1 }
 0x264   :  { %v3352_v15 = vadd.f32 %v1925_v55, %v3261_v9  ;;  %v1928_v4 = vadd.f32 %v1927_v35, %v1926_v27 }
 0x266   :  { %v3355_v56 = vadd.f32 %v1928_v4, %v3261_v9  ;;  %1537 = vmax.xlane.f32.xlu1 %v3352_v15 }
 0x268   :  { %1539 = vmax.xlane.f32.xlu0 %v3355_v56 }
 0x27c   :  { %v1881_v2 = vpop.f32.mrb[24].mxu0  ;;  %v1486_v59 = vpop.xlane.xlu0 %1485 }
 0x27d   :  { %v1882_v23 = vpop.f32.mrb[25].mxu0  ;;  %v1549_v52 = vsub.f32 %v3264_v6, %v1486_v59 }
 0x27e   :  { %v1883_v48 = vadd.f32 %v1882_v23, %v1881_v2  ;;  %v1884_v10 = vpop.f32.mrb[26].mxu0 }
 0x27f   :  { %v1885_v29 = vpop.f32.mrb[27].mxu0  ;;  %v1581_v20 = vmul.f32 1.442695, %v1549_v52 }
 0x280   :  { %v3360_v40 = vadd.f32 %v1883_v48, %v3261_v9  ;;  %v1886_v39 = vadd.f32 %v1885_v29, %v1884_v10  ;;  %v1929_v25 = vpop.f32.mrb[24].mxu1 }
 0x281   :  { %v1930_v12 = vpop.f32.mrb[25].mxu1  ;;  %2008 = vpow2.f32 %v1581_v20 }
 0x282   :  { %v3363_v34 = vadd.f32 %v1886_v39, %v3261_v9  ;;  %v1931_v26 = vadd.f32 %v1930_v12, %v1929_v25  ;;  %v1932_v30 = vpop.f32.mrb[26].mxu1  ;;  %1509 = vmax.xlane.f32.xlu1 %v3360_v40  ;;  %v1518_v42 = vpop.xlane.xlu1 %1517 }
 0x283   :  { %v1933_v32 = vpop.f32.mrb[27].mxu1  ;;  %v1565_v57 = vsub.f32 %v3268_v62, %v1518_v42 }
 0x284   :  { %v3367_v41 = vadd.f32 %v1931_v26, %v3261_v9  ;;  %v1934_v51 = vadd.f32 %v1933_v32, %v1932_v30  ;;  %1511 = vmax.xlane.f32.xlu0 %v3363_v34  ;;  %v1520_v53 = vpop.xlane.xlu0 %1519 }
 0x285   :  { %v1566_v43 = vsub.f32 %v3271_v19, %v1520_v53 }
 0x286   :  { %v3371_v22 = vadd.f32 %v1934_v51, %v3261_v9  ;;  %1541 = vmax.xlane.f32.xlu1 %v3367_v41  ;;  %v1488_v54 = vpop.xlane.xlu1 %1487 }
 0x287   :  { %v1550_v61 = vsub.f32 %v3275_v28, %v1488_v54  ;;  %v1613_v28 = vmul.f32 1.442695, %v1565_v57  ;;  %v1615_v4 = vmul.f32 1.442695, %v1566_v43 }
 0x288   :  { %1543 = vmax.xlane.f32.xlu0 %v3371_v22  ;;  %v1490_v50 = vpop.xlane.xlu0 %1489 }
 0x289   :  { %v1583_v55 = vmul.f32 1.442695, %v1550_v61  ;;  %v1551_v35 = vsub.f32 %v3279_v38, %v1490_v50 }
 0x28a   :  { %v1522_v37 = vpop.xlane.xlu1 %1521 }
 0x28b   :  { %2010 = vpow2.f32 %v1583_v55  ;;  %v1585_v29 = vmul.f32 1.442695, %v1551_v35  ;;  %v1567_v39 = vsub.f32 %v3283_v24, %v1522_v37  ;;  %v3400_v53 = vpop.eup %2008 }
 0x28c   :  { %v1492_v58 = vpop.xlane.xlu0 %1491  ;;  %2012 = vpow2.f32 %v1613_v28 }
 0x28d   :  { %v1552_v2 = vsub.f32 %v3287_v14, %v1492_v58  ;;  %2014 = vpow2.f32 %v1615_v4  ;;  %v1617_v51 = vmul.f32 1.442695, %v1567_v39 }
 0x28e   :  { %v1494_v19 = vpop.xlane.xlu1 %1493  ;;  %2016 = vpow2.f32 %v1585_v29 }
 0x28f   :  { %v1587_v30 = vmul.f32 1.442695, %v1552_v2  ;;  %v1553_v59 = vsub.f32 %v3291_v31, %v1494_v19 }
 0x290   :  { %v1524_v6 = vpop.xlane.xlu0 %1523 }
 0x291   :  { %v1568_v32 = vsub.f32 %v3295_v13, %v1524_v6  ;;  %2018 = vpow2.f32 %v1587_v30  ;;  %v1589_v13 = vmul.f32 1.442695, %v1553_v59 }
 0x292   :  { %v1526_v24 = vpop.xlane.xlu1 %1525  ;;  %2020 = vpow2.f32 %v1617_v51 }
 0x293   :  { %v1619_v42 = vmul.f32 1.442695, %v1568_v32  ;;  %v1569_v52 = vsub.f32 %v3299_v17, %v1526_v24 }
 0x294   :  { %v1496_v12 = vpop.xlane.xlu0 %1495 }
 0x295   :  { %v1554_v50 = vsub.f32 %v3303_v45, %v1496_v12  ;;  %2022 = vpow2.f32 %v1619_v42 }
 0x296   :  { %2024 = vpow2.f32 %v1589_v13 }
 0x298   :  { %v1528_v54 = vpop.xlane.xlu0 %1527 }
 0x299   :  { %v1570_v61 = vsub.f32 %v3308_v5, %v1528_v54 }
 0x29b   :  { %v1887_v46 = vpop.f32.mrb[28].mxu0  ;;  %v1623_v57 = vmul.f32 1.442695, %v1570_v61 }
 0x29c   :  { %v1888_v16 = vpop.f32.mrb[29].mxu0 }
 0x29d   :  { %v1889_v44 = vadd.f32 %v1888_v16, %v1887_v46  ;;  %v1890_v33 = vpop.f32.mrb[30].mxu0  ;;  %v1591_v46 = vmul.f32 1.442695, %v1554_v50 }
 0x29e   :  { %v1891_v47 = vpop.f32.mrb[31].mxu0 }
 0x29f   :  { %v3379_v0 = vadd.f32 %v1889_v44, %v3261_v9  ;;  %v1892_v7 = vadd.f32 %v1891_v47, %v1890_v33  ;;  %v1621_v44 = vmul.f32 1.442695, %v1569_v52  ;;  %2026 = vpow2.f32 %v1591_v46 }
 0x2a1   :  { %v3383_v27 = vadd.f32 %v1892_v7, %v3261_v9  ;;  %1513 = vmax.xlane.f32.xlu1 %v3379_v0  ;;  %2028 = vpow2.f32 %v1621_v44 }
 0x2a2   :  { %2030 = vpow2.f32 %v1623_v57 }
 0x2a3   :  { %v1935_v62 = vpop.f32.mrb[28].mxu1  ;;  %1515 = vmax.xlane.f32.xlu0 %v3383_v27 }
 0x2a4   :  { %v1936_v23 = vpop.f32.mrb[29].mxu1 }
 0x2a5   :  { %v1937_v48 = vadd.f32 %v1936_v23, %v1935_v62  ;;  %v1938_v10 = vpop.f32.mrb[30].mxu1 }
 0x2a6   :  { %v1939_v25 = vpop.f32.mrb[31].mxu1 }
 0x2a7   :  { %v3391_v26 = vadd.f32 %v1937_v48, %v3261_v9  ;;  %v1940_v38 = vadd.f32 %v1939_v25, %v1938_v10 }
 0x2a9   :  { %v3395_v14 = vadd.f32 %v1940_v38, %v3261_v9  ;;  %1545 = vmax.xlane.f32.xlu1 %v3391_v26  ;;  %v3404_v9 = vpop.eup %2010  ;;  %v1498_v58 = vpop.xlane.xlu1 %1497 }
 0x2aa   :  { %v3408_v31 = vpop.eup %2012  ;;  %v1555_v33 = vsub.f32 %v3312_v63, %v1498_v58 }
 0x2ab   :  { %1547 = vmax.xlane.f32.xlu0 %v3395_v14  ;;  %v1500_v16 = vpop.xlane.xlu0 %1499  ;;  %v3412_v45 = vpop.eup %2014 }
 0x2ac   :  { %v3416_v17 = vpop.eup %2016  ;;  %v1556_v47 = vsub.f32 %v3315_v21, %v1500_v16  ;;  %v1593_v7 = vmul.f32 1.442695, %v1555_v33 }
 0x2ad   :  { %1645 = vadd.xlane.f32.xlu1 %v3400_v53  ;;  %v3420_v5 = vpop.eup %2018 }
 0x2ae   :  { %v3424_v63 = vpop.eup %2020  ;;  %v1595_v55 = vmul.f32 1.442695, %v1556_v47  ;;  %2032 = vpow2.f32 %v1593_v7 }
 0x2af   :  { %1647 = vadd.xlane.f32.xlu0 %v3404_v9  ;;  %v3428_v21 = vpop.eup %2022 }
 0x2b0   :  { %v3431_v35 = vpop.eup %2024  ;;  %2034 = vpow2.f32 %v1595_v55 }
 0x2b1   :  { %1677 = vadd.xlane.f32.xlu1 %v3408_v31  ;;  %v1530_v20 = vpop.xlane.xlu1 %1529  ;;  %v3434_v62 = vpop.eup %2026 }
 0x2b2   :  { %v1571_v43 = vsub.f32 %v3320_v11, %v1530_v20 }
 0x2b3   :  { %1679 = vadd.xlane.f32.xlu0 %v3412_v45  ;;  %v1532_v37 = vpop.xlane.xlu0 %1531 }
 0x2b4   :  { %v1572_v6 = vsub.f32 %v3323_v49, %v1532_v37  ;;  %v1625_v28 = vmul.f32 1.442695, %v1571_v43  ;;  %v3437_v49 = vpop.eup %2028 }
 0x2b5   :  { %1649 = vadd.xlane.f32.xlu1 %v3416_v17  ;;  %v3440_v4 = vpop.eup %2030 }
 0x2b6   :  { %v1627_v11 = vmul.f32 1.442695, %v1572_v6  ;;  %2036 = vpow2.f32 %v1625_v28 }
 0x2b7   :  { %1651 = vadd.xlane.f32.xlu0 %v3420_v5 }
 0x2b8   :  { %2038 = vpow2.f32 %v1627_v11  ;;  %v3443_v2 = vpop.eup %2032 }
 0x2b9   :  { %1681 = vadd.xlane.f32.xlu1 %v3424_v63 }
 0x2ba   :  { %v3446_v23 = vpop.eup %2034 }
 0x2bb   :  { %1683 = vadd.xlane.f32.xlu0 %v3428_v21 }
 0x2bd   :  { %1653 = vadd.xlane.f32.xlu1 %v3431_v35 }
 0x2bf   :  { %1655 = vadd.xlane.f32.xlu0 %v3434_v62 }
 0x2c0   :  { %v3449_v19 = vpop.eup %2036 }
 0x2c1   :  { %1685 = vadd.xlane.f32.xlu1 %v3437_v49 }
 0x2c2   :  { %v3452_v48 = vpop.eup %2038 }
 0x2c3   :  { %1687 = vadd.xlane.f32.xlu0 %v3440_v4 }
 0x2c5   :  { %1657 = vadd.xlane.f32.xlu1 %v3443_v2 }
 0x2c7   :  { %1659 = vadd.xlane.f32.xlu0 %v3446_v23 }
 0x2c9   :  { %1689 = vadd.xlane.f32.xlu1 %v3449_v19 }
 0x2cb   :  { %1691 = vadd.xlane.f32.xlu0 %v3452_v48 }
 0x2cc   :  { %v1502_v10 = vpop.xlane.xlu1 %1501 }
 0x2cd   :  { %v1557_v29 = vsub.f32 %v3328_v18, %v1502_v10 }
 0x2ce   :  { %v1504_v39 = vpop.xlane.xlu0 %1503 }
 0x2cf   :  { %v1597_v25 = vmul.f32 1.442695, %v1557_v29  ;;  %v1558_v12 = vsub.f32 %v3331_v8, %v1504_v39 }
 0x2d0   :  { %v1534_v38 = vpop.xlane.xlu1 %1533 }
 0x2d1   :  { %2040 = vpow2.f32 %v1597_v25  ;;  %v1599_v30 = vmul.f32 1.442695, %v1558_v12  ;;  %v1573_v32 = vsub.f32 %v3335_v3, %v1534_v38 }
 0x2d2   :  { %v1536_v51 = vpop.xlane.xlu0 %1535 }
 0x2d3   :  { %2042 = vpow2.f32 %v1599_v30  ;;  %v1629_v59 = vmul.f32 1.442695, %v1573_v32  ;;  %v1574_v24 = vsub.f32 %v3339_v60, %v1536_v51 }
 0x2d5   :  { %2044 = vpow2.f32 %v1629_v59  ;;  %v1631_v42 = vmul.f32 1.442695, %v1574_v24 }
 0x2d7   :  { %2046 = vpow2.f32 %v1631_v42 }
 0x2db   :  { %v3459_v50 = vpop.eup %2040 }
 0x2dc   :  { %1661 = vadd.xlane.f32.xlu1 %v3459_v50 }
 0x2dd   :  { %v3462_v18 = vpop.eup %2042 }
 0x2de   :  { %1663 = vadd.xlane.f32.xlu0 %v3462_v18 }
 0x2df   :  { %v3465_v8 = vpop.eup %2044 }
 0x2e0   :  { %1693 = vadd.xlane.f32.xlu1 %v3465_v8 }
 0x2e1   :  { %v3468_v3 = vpop.eup %2046 }
 0x2e2   :  { %1695 = vadd.xlane.f32.xlu0 %v3468_v3 }
 0x2eb   :  { %v1506_v60 = vpop.xlane.xlu1 %1505 }
 0x2ec   :  { %v1559_v54 = vsub.f32 %v3344_v1, %v1506_v60 }
 0x2ed   :  { %v1508_v13 = vpop.xlane.xlu0 %1507 }
 0x2ee   :  { %v1601_v52 = vmul.f32 1.442695, %v1559_v54  ;;  %v1560_v58 = vsub.f32 %v3347_v36, %v1508_v13 }
 0x2f0   :  { %2048 = vpow2.f32 %v1601_v52  ;;  %v1603_v46 = vmul.f32 1.442695, %v1560_v58 }
 0x2f2   :  { %2050 = vpow2.f32 %v1603_v46 }
 0x2f3   :  { %v1538_v61 = vpop.xlane.xlu1 %1537 }
 0x2f4   :  { %v1575_v16 = vsub.f32 %v3352_v15, %v1538_v61 }
 0x2f5   :  { %v1540_v44 = vpop.xlane.xlu0 %1539 }
 0x2f6   :  { %v1633_v33 = vmul.f32 1.442695, %v1575_v16  ;;  %v1576_v20 = vsub.f32 %v3355_v56, %v1540_v44 }
 0x2f8   :  { %2052 = vpow2.f32 %v1633_v33  ;;  %v1635_v57 = vmul.f32 1.442695, %v1576_v20 }
 0x2fa   :  { %v3475_v47 = vpop.eup %2048  ;;  %2054 = vpow2.f32 %v1635_v57 }
 0x2fb   :  { %1665 = vadd.xlane.f32.xlu1 %v3475_v47 }
 0x2fc   :  { %v3478_v1 = vpop.eup %2050 }
 0x2fd   :  { %1667 = vadd.xlane.f32.xlu0 %v3478_v1 }
 0x302   :  { %v3481_v36 = vpop.eup %2052 }
 0x303   :  { %1697 = vadd.xlane.f32.xlu1 %v3481_v36 }
 0x304   :  { %v3484_v15 = vpop.eup %2054 }
 0x305   :  { %1699 = vadd.xlane.f32.xlu0 %v3484_v15 }
 0x30f   :  { %v1510_v56 = vpop.xlane.xlu1 %1509 }
 0x310   :  { %v1561_v37 = vsub.f32 %v3360_v40, %v1510_v56 }
 0x311   :  { %v1512_v7 = vpop.xlane.xlu0 %1511 }
 0x312   :  { %v1605_v43 = vmul.f32 1.442695, %v1561_v37  ;;  %v1562_v55 = vsub.f32 %v3363_v34, %v1512_v7 }
 0x313   :  { %v1542_v6 = vpop.xlane.xlu1 %1541 }
 0x314   :  { %2056 = vpow2.f32 %v1605_v43  ;;  %v1607_v28 = vmul.f32 1.442695, %v1562_v55  ;;  %v1577_v11 = vsub.f32 %v3367_v41, %v1542_v6 }
 0x315   :  { %v1544_v10 = vpop.xlane.xlu0 %1543 }
 0x316   :  { %2058 = vpow2.f32 %v1607_v28  ;;  %v1637_v29 = vmul.f32 1.442695, %v1577_v11  ;;  %v1578_v39 = vsub.f32 %v3371_v22, %v1544_v10 }
 0x318   :  { %2060 = vpow2.f32 %v1637_v29  ;;  %v1639_v25 = vmul.f32 1.442695, %v1578_v39 }
 0x31a   :  { %2062 = vpow2.f32 %v1639_v25 }
 0x31e   :  { %v3491_v12 = vpop.eup %2056 }
 0x31f   :  { %1669 = vadd.xlane.f32.xlu1 %v3491_v12 }
 0x320   :  { %v3494_v40 = vpop.eup %2058 }
 0x321   :  { %1671 = vadd.xlane.f32.xlu0 %v3494_v40 }
 0x322   :  { %v3497_v34 = vpop.eup %2060 }
 0x323   :  { %1701 = vadd.xlane.f32.xlu1 %v3497_v34 }
 0x324   :  { %v3500_v41 = vpop.eup %2062 }
 0x325   :  { %1703 = vadd.xlane.f32.xlu0 %v3500_v41 }
 0x32e   :  { %v1514_v22 = vpop.xlane.xlu1 %1513 }
 0x32f   :  { %v1563_v38 = vsub.f32 %v3379_v0, %v1514_v22 }
 0x330   :  { %v1516_v30 = vpop.xlane.xlu0 %1515 }
 0x331   :  { %v1609_v32 = vmul.f32 1.442695, %v1563_v38  ;;  %v1564_v51 = vsub.f32 %v3383_v27, %v1516_v30 }
 0x333   :  { %2064 = vpow2.f32 %v1609_v32  ;;  %v1611_v59 = vmul.f32 1.442695, %v1564_v51 }
 0x335   :  { %2066 = vpow2.f32 %v1611_v59 }
 0x336   :  { %v1546_v24 = vpop.xlane.xlu1 %1545 }
 0x337   :  { %v1579_v42 = vsub.f32 %v3391_v26, %v1546_v24 }
 0x338   :  { %v1548_v60 = vpop.xlane.xlu0 %1547 }
 0x339   :  { %v1641_v54 = vmul.f32 1.442695, %v1579_v42  ;;  %v1580_v13 = vsub.f32 %v3395_v14, %v1548_v60 }
 0x33a   :  { %v1646_v52 = vpop.xlane.xlu1 %1645 }
 0x33b   :  { %2068 = vpow2.f32 %v1641_v54  ;;  %v1643_v58 = vmul.f32 1.442695, %v1580_v13 }
 0x33c   :  { %2070 = vrcp.f32 %v1646_v52  ;;  %v1648_v46 = vpop.xlane.xlu0 %1647 }
 0x33d   :  { %v3507_v0 = vpop.eup %2064  ;;  %2072 = vpow2.f32 %v1643_v58 }
 0x33e   :  { %2074 = vrcp.f32 %v1648_v46  ;;  %v1678_v27 = vpop.xlane.xlu1 %1677  ;;  %1673 = vadd.xlane.f32.xlu1 %v3507_v0 }
 0x33f   :  { %v3510_v61 = vpop.eup %2066  ;;  %2076 = vrcp.f32 %v1678_v27 }
 0x340   :  { %1675 = vadd.xlane.f32.xlu0 %v3510_v61  ;;  %v1680_v26 = vpop.xlane.xlu0 %1679 }
 0x341   :  { %2078 = vrcp.f32 %v1680_v26 }
 0x342   :  { %v1650_v14 = vpop.xlane.xlu1 %1649 }
 0x343   :  { %2080 = vrcp.f32 %v1650_v14 }
 0x344   :  { %v1652_v16 = vpop.xlane.xlu0 %1651 }
 0x345   :  { %v3513_v44 = vpop.eup %2068  ;;  %2082 = vrcp.f32 %v1652_v16 }
 0x346   :  { %v2071_v33 = vpop.eup %2070  ;;  %1705 = vadd.xlane.f32.xlu1 %v3513_v44  ;;  %v1682_v20 = vpop.xlane.xlu1 %1681 }
 0x347   :  { %v3516_v57 = vpop.eup %2072  ;;  %v1710_v56 = vmul.f32 %v2071_v33, %v3400_v53  ;;  %2084 = vrcp.f32 %v1682_v20 }
 0x348   :  { %v2075_v37 = vpop.eup %2074  ;;  %1707 = vadd.xlane.f32.xlu0 %v3516_v57  ;;  %v1684_v7 = vpop.xlane.xlu0 %1683 }
 0x349   :  { %v2077_v43 = vpop.eup %2076  ;;  %1773 = vst [vmem:[%s3651_s4] sm:$0xff] %v1710_v56  ;;  %v1712_v55 = vmul.f32 %v2075_v37, %v3404_v9  ;;  %2086 = vrcp.f32 %v1684_v7 }
 0x34a   :  { %v1742_v6 = vmul.f32 %v2077_v43, %v3408_v31  ;;  %v1654_v28 = vpop.xlane.xlu1 %1653 }
 0x34b   :  { %v2079_v11 = vpop.eup %2078  ;;  %1774 = vst [vmem:[%s3651_s4 + $0x8] sm:$0xff] %v1712_v55  ;;  %2088 = vrcp.f32 %v1654_v28 }
 0x34c   :  { %1789 = vst [vmem:[%s3651_s4 + $0x80] sm:$0xff] %v1742_v6  ;;  %v1744_v53 = vmul.f32 %v2079_v11, %v3412_v45  ;;  %v1656_v10 = vpop.xlane.xlu0 %1655 }
 0x34d   :  { %v2081_v29 = vpop.eup %2080  ;;  %2090 = vrcp.f32 %v1656_v10 }
 0x34e   :  { %1790 = vst [vmem:[%s3651_s4 + $0x88] sm:$0xff] %v1744_v53  ;;  %v1714_v9 = vmul.f32 %v2081_v29, %v3416_v17  ;;  %v1686_v31 = vpop.xlane.xlu1 %1685 }
 0x34f   :  { %v2083_v39 = vpop.eup %2082  ;;  %2092 = vrcp.f32 %v1686_v31 }
 0x350   :  { %1775 = vst [vmem:[%s3651_s4 + $0x10] sm:$0xff] %v1714_v9  ;;  %v1716_v25 = vmul.f32 %v2083_v39, %v3420_v5  ;;  %v1688_v22 = vpop.xlane.xlu0 %1687 }
 0x351   :  { %v2085_v45 = vpop.eup %2084  ;;  %2094 = vrcp.f32 %v1688_v22 }
 0x352   :  { %1776 = vst [vmem:[%s3651_s4 + $0x18] sm:$0xff] %v1716_v25  ;;  %v1746_v38 = vmul.f32 %v2085_v45, %v3424_v63  ;;  %v1658_v30 = vpop.xlane.xlu1 %1657 }
 0x353   :  { %v2087_v17 = vpop.eup %2086  ;;  %2096 = vrcp.f32 %v1658_v30 }
 0x354   :  { %1791 = vst [vmem:[%s3651_s4 + $0x90] sm:$0xff] %v1746_v38  ;;  %v1748_v32 = vmul.f32 %v2087_v17, %v3428_v21  ;;  %v1660_v51 = vpop.xlane.xlu0 %1659 }
 0x355   :  { %v2089_v5 = vpop.eup %2088  ;;  %2098 = vrcp.f32 %v1660_v51 }
 0x356   :  { %1792 = vst [vmem:[%s3651_s4 + $0x98] sm:$0xff] %v1748_v32  ;;  %v1718_v59 = vmul.f32 %v2089_v5, %v3431_v35  ;;  %v1690_v24 = vpop.xlane.xlu1 %1689 }
 0x357   :  { %v2091_v63 = vpop.eup %2090  ;;  %2100 = vrcp.f32 %v1690_v24 }
 0x358   :  { %1777 = vst [vmem:[%s3651_s4 + $0x20] sm:$0xff] %v1718_v59  ;;  %v1720_v42 = vmul.f32 %v2091_v63, %v3434_v62  ;;  %v1692_v60 = vpop.xlane.xlu0 %1691 }
 0x359   :  { %v2093_v21 = vpop.eup %2092  ;;  %2102 = vrcp.f32 %v1692_v60 }
 0x35a   :  { %1778 = vst [vmem:[%s3651_s4 + $0x28] sm:$0xff] %v1720_v42  ;;  %v1750_v54 = vmul.f32 %v2093_v21, %v3437_v49 }
 0x35b   :  { %v2095_v13 = vpop.eup %2094 }
 0x35c   :  { %1793 = vst [vmem:[%s3651_s4 + $0xa0] sm:$0xff] %v1750_v54  ;;  %v1752_v35 = vmul.f32 %v2095_v13, %v3440_v4 }
 0x35d   :  { %v2097_v52 = vpop.eup %2096 }
 0x35e   :  { %1794 = vst [vmem:[%s3651_s4 + $0xa8] sm:$0xff] %v1752_v35  ;;  %v1722_v62 = vmul.f32 %v2097_v52, %v3443_v2 }
 0x35f   :  { %v2099_v58 = vpop.eup %2098 }
 0x360   :  { %1779 = vst [vmem:[%s3651_s4 + $0x30] sm:$0xff] %v1722_v62  ;;  %v1724_v49 = vmul.f32 %v2099_v58, %v3446_v23 }
 0x361   :  { %v2101_v46 = vpop.eup %2100 }
 0x362   :  { %1780 = vst [vmem:[%s3651_s4 + $0x38] sm:$0xff] %v1724_v49  ;;  %v1754_v4 = vmul.f32 %v2101_v46, %v3449_v19 }
 0x363   :  { %v2103_v27 = vpop.eup %2102 }
 0x364   :  { %1795 = vst [vmem:[%s3651_s4 + $0xb0] sm:$0xff] %v1754_v4  ;;  %v1756_v2 = vmul.f32 %v2103_v27, %v3452_v48 }
 0x366   :  { %1796 = vst [vmem:[%s3651_s4 + $0xb8] sm:$0xff] %v1756_v2 }
 0x369   :  { %v1662_v26 = vpop.xlane.xlu1 %1661 }
 0x36a   :  { %2104 = vrcp.f32 %v1662_v26 }
 0x36b   :  { %v1664_v23 = vpop.xlane.xlu0 %1663 }
 0x36c   :  { %2106 = vrcp.f32 %v1664_v23 }
 0x36d   :  { %v1694_v14 = vpop.xlane.xlu1 %1693 }
 0x36e   :  { %2108 = vrcp.f32 %v1694_v14 }
 0x36f   :  { %v1696_v16 = vpop.xlane.xlu0 %1695 }
 0x370   :  { %2110 = vrcp.f32 %v1696_v16 }
 0x374   :  { %v2105_v19 = vpop.eup %2104 }
 0x375   :  { %v1726_v33 = vmul.f32 %v2105_v19, %v3459_v50 }
 0x376   :  { %v2107_v20 = vpop.eup %2106 }
 0x377   :  { %1781 = vst [vmem:[%s3651_s4 + $0x40] sm:$0xff] %v1726_v33  ;;  %v1728_v48 = vmul.f32 %v2107_v20, %v3462_v18 }
 0x378   :  { %v2109_v56 = vpop.eup %2108 }
 0x379   :  { %1782 = vst [vmem:[%s3651_s4 + $0x48] sm:$0xff] %v1728_v48  ;;  %v1758_v37 = vmul.f32 %v2109_v56, %v3465_v8 }
 0x37a   :  { %v2111_v7 = vpop.eup %2110 }
 0x37b   :  { %1797 = vst [vmem:[%s3651_s4 + $0xc0] sm:$0xff] %v1758_v37  ;;  %v1760_v50 = vmul.f32 %v2111_v7, %v3468_v3 }
 0x37d   :  { %1798 = vst [vmem:[%s3651_s4 + $0xc8] sm:$0xff] %v1760_v50 }
 0x388   :  { %v1666_v43 = vpop.xlane.xlu1 %1665 }
 0x389   :  { %2112 = vrcp.f32 %v1666_v43 }
 0x38a   :  { %v1668_v18 = vpop.xlane.xlu0 %1667 }
 0x38b   :  { %2114 = vrcp.f32 %v1668_v18 }
 0x390   :  { %v1698_v55 = vpop.xlane.xlu1 %1697 }
 0x391   :  { %2116 = vrcp.f32 %v1698_v55 }
 0x392   :  { %v1700_v6 = vpop.xlane.xlu0 %1699 }
 0x393   :  { %v2113_v28 = vpop.eup %2112  ;;  %2118 = vrcp.f32 %v1700_v6 }
 0x394   :  { %v1730_v8 = vmul.f32 %v2113_v28, %v3475_v47 }
 0x395   :  { %v2115_v11 = vpop.eup %2114 }
 0x396   :  { %1783 = vst [vmem:[%s3651_s4 + $0x50] sm:$0xff] %v1730_v8  ;;  %v1732_v3 = vmul.f32 %v2115_v11, %v3478_v1 }
 0x398   :  { %1784 = vst [vmem:[%s3651_s4 + $0x58] sm:$0xff] %v1732_v3 }
 0x39b   :  { %v2117_v53 = vpop.eup %2116 }
 0x39c   :  { %v1762_v10 = vmul.f32 %v2117_v53, %v3481_v36 }
 0x39d   :  { %v2119_v29 = vpop.eup %2118 }
 0x39e   :  { %1799 = vst [vmem:[%s3651_s4 + $0xd0] sm:$0xff] %v1762_v10  ;;  %v1764_v47 = vmul.f32 %v2119_v29, %v3484_v15 }
 0x3a0   :  { %1800 = vst [vmem:[%s3651_s4 + $0xd8] sm:$0xff] %v1764_v47 }
 0x3ac   :  { %v1670_v9 = vpop.xlane.xlu1 %1669 }
 0x3ad   :  { %2120 = vrcp.f32 %v1670_v9 }
 0x3ae   :  { %v1672_v1 = vpop.xlane.xlu0 %1671 }
 0x3af   :  { %2122 = vrcp.f32 %v1672_v1 }
 0x3b0   :  { %v1702_v31 = vpop.xlane.xlu1 %1701 }
 0x3b1   :  { %2124 = vrcp.f32 %v1702_v31 }
 0x3b2   :  { %v1704_v39 = vpop.xlane.xlu0 %1703 }
 0x3b3   :  { %2126 = vrcp.f32 %v1704_v39 }
 0x3b7   :  { %v2121_v36 = vpop.eup %2120 }
 0x3b8   :  { %v1734_v25 = vmul.f32 %v2121_v36, %v3491_v12 }
 0x3b9   :  { %v2123_v22 = vpop.eup %2122 }
 0x3ba   :  { %1785 = vst [vmem:[%s3651_s4 + $0x60] sm:$0xff] %v1734_v25  ;;  %v1736_v15 = vmul.f32 %v2123_v22, %v3494_v40 }
 0x3bb   :  { %v2125_v45 = vpop.eup %2124 }
 0x3bc   :  { %1786 = vst [vmem:[%s3651_s4 + $0x68] sm:$0xff] %v1736_v15  ;;  %v1766_v38 = vmul.f32 %v2125_v45, %v3497_v34 }
 0x3bd   :  { %v2127_v30 = vpop.eup %2126 }
 0x3be   :  { %1801 = vst [vmem:[%s3651_s4 + $0xe0] sm:$0xff] %v1766_v38  ;;  %v1768_v12 = vmul.f32 %v2127_v30, %v3500_v41 }
 0x3c0   :  { %1802 = vst [vmem:[%s3651_s4 + $0xe8] sm:$0xff] %v1768_v12 }
 0x3cb   :  { %v1674_v17 = vpop.xlane.xlu1 %1673 }
 0x3cc   :  { %2128 = vrcp.f32 %v1674_v17 }
 0x3cd   :  { %v1676_v40 = vpop.xlane.xlu0 %1675 }
 0x3ce   :  { %2130 = vrcp.f32 %v1676_v40 }
 0x3d3   :  { %v1706_v32 = vpop.xlane.xlu1 %1705 }
 0x3d4   :  { %2132 = vrcp.f32 %v1706_v32 }
 0x3d5   :  { %v1708_v51 = vpop.xlane.xlu0 %1707 }
 0x3d6   :  { %v2129_v5 = vpop.eup %2128  ;;  %2134 = vrcp.f32 %v1708_v51 }
 0x3d7   :  { %v1738_v34 = vmul.f32 %v2129_v5, %v3507_v0 }
 0x3d8   :  { %v2131_v59 = vpop.eup %2130 }
 0x3d9   :  { %1787 = vst [vmem:[%s3651_s4 + $0x70] sm:$0xff] %v1738_v34  ;;  %v1740_v41 = vmul.f32 %v2131_v59, %v3510_v61 }
 0x3db   :  { %1788 = vst [vmem:[%s3651_s4 + $0x78] sm:$0xff] %v1740_v41 }
 0x3de   :  { %v2133_v24 = vpop.eup %2132 }
 0x3df   :  { %v1770_v63 = vmul.f32 %v2133_v24, %v3513_v44 }
 0x3e0   :  { %v2135_v42 = vpop.eup %2134 }
 0x3e1   :  { %1803 = vst [vmem:[%s3651_s4 + $0xf0] sm:$0xff] %v1770_v63  ;;  %v1772_v0 = vmul.f32 %v2135_v42, %v3516_v57 }
 0x3e3   :  { %1804 = vst [vmem:[%s3651_s4 + $0xf8] sm:$0xff] %v1772_v0 }

</bundles_post_ra>
